<compile_context>
chip_gen: v5e
topology: v5e:2x2
jax: 0.10.0
libtpu: 0.0.40
codegen_flags: <defaults>
</compile_context>

<pallas_src>
import functools

import jax
import jax.numpy as jnp
from jax.experimental import pallas as pl
from jax.experimental.pallas import tpu as pltpu

_EPS = 1e-5


# ------------------------------------------------------------ lane helpers --
def _lane_moments(z, t):
    # z: (C, T) -> lane-partial (C, 128) sum and sum-of-squares.
    # Static 128-lane slices => pure VPU vreg adds (no XLU reduce trees).
    s = z[:, 0:128]
    s2 = s * s
    for k in range(1, t // 128):
        c = z[:, k * 128:(k + 1) * 128]
        s = s + c
        s2 = s2 + c * c
    return s, s2


def _lane_fold(z, t):
    # z: (R, T) -> (R, 128) lane-partial sum.
    s = z[:, 0:128]
    for k in range(1, t // 128):
        s = s + z[:, k * 128:(k + 1) * 128]
    return s


# ---------------------------------------------------------------- pass 1 ----
def _conv_stats_kernel(g_ref, x_ref, wg_ref, wx_ref,
                       g1_ref, x1_ref, sg_ref, sg2_ref, sx_ref, sx2_ref,
                       *, tile):
    # g_ref: (1, F_g, T)   x_ref: (1, F_l, T)
    # wg_ref: (F_int, F_g) wx_ref: (F_int, F_l)
    # g1_ref/x1_ref: (1, F_int, T) per-step outputs
    # s*_ref: (1, F_int, 128) per-batch resident accumulators (index = (b,0,0))
    @pl.when(pl.program_id(1) == 0)
    def _():
        sg_ref[...] = jnp.zeros_like(sg_ref)
        sg2_ref[...] = jnp.zeros_like(sg2_ref)
        sx_ref[...] = jnp.zeros_like(sx_ref)
        sx2_ref[...] = jnp.zeros_like(sx2_ref)

    g = g_ref[0].astype(jnp.float32)                                # (F_g, T)
    x = x_ref[0].astype(jnp.float32)                                # (F_l, T)
    g1 = jnp.dot(wg_ref[...], g, preferred_element_type=jnp.float32)  # (F_int, T)
    x1 = jnp.dot(wx_ref[...], x, preferred_element_type=jnp.float32)  # (F_int, T)
    g1_ref[0] = g1.astype(g1_ref.dtype)
    x1_ref[0] = x1.astype(x1_ref.dtype)

    s, s2 = _lane_moments(g1, tile)
    sg_ref[0] += s
    sg2_ref[0] += s2
    s, s2 = _lane_moments(x1, tile)
    sx_ref[0] += s
    sx2_ref[0] += s2


# ---------------------------------------------------------------- pass 2 ----
def _psi_kernel(g1_ref, x1_ref, ag_ref, ax_ref, bias_ref, wpsi_ref,
                psi_ref, ps_ref, ps2_ref, *, tile, hw, needs_mask):
    # BN(g1)+BN(x1) with the affine applied on the VPU (no re-read of g/x):
    #   y = a_g*g1 + a_x*x1 + (c_g + c_x)
    g1 = g1_ref[0].astype(jnp.float32)                              # (F_int, T)
    x1 = x1_ref[0].astype(jnp.float32)
    y = ag_ref[...] * g1 + ax_ref[...] * x1 + bias_ref[...]
    y = jnp.maximum(y, 0.2 * y)                                     # LeakyReLU(0.2)
    psi = jnp.dot(wpsi_ref[...], y, preferred_element_type=jnp.float32)  # (1, T)
    psi_ref[0] = psi

    if needs_mask:  # exclude padded spatial columns from the psi batch stats
        col = (pl.program_id(1) * tile
               + jax.lax.broadcasted_iota(jnp.int32, (1, tile), 1))
        psi = psi * (col < hw).astype(jnp.float32)
    ps_ref[0] = _lane_fold(psi, tile)
    ps2_ref[0] = _lane_fold(psi * psi, tile)


# ---------------------------------------------------------------- pass 3 ----
def _gate_kernel(x_ref, psi_ref, bn_ref, out_ref):
    # x_ref: (1, F_l, T)  psi_ref: (1, 1, T)  bn_ref: SMEM (2,) = [a_psi, c_psi]
    a = bn_ref[0]
    c = bn_ref[1]
    scale = jax.nn.sigmoid(a * psi_ref[0] + c)                      # (1, T)
    out_ref[0] = (x_ref[0].astype(jnp.float32) * scale).astype(out_ref.dtype)


# ------------------------------------------------------------ tile budget ---
def _vmem_capacity_bytes():
    default = 64 * 2 ** 20  # conservative: v7x physical VMEM per TensorCore
    try:
        info = pltpu.get_tpu_info()
    except Exception:
        return default
    for name in ("vmem_capacity_bytes", "vmem_size_bytes", "vmem_bytes"):
        v = getattr(info, name, None)
        if isinstance(v, int) and v > 0:
            return v
    return default


def _per_col_vmem_bytes(f_g, f_l, f_int, in_b, act_b, out_b):
    # Heaviest per-spatial-column VMEM across the three passes:
    # double-buffered pipeline I/O plus in-kernel f32 temporaries.
    p1 = 2 * ((f_g + f_l) * in_b + 2 * f_int * act_b) + (f_g + f_l + 2 * f_int) * 4
    p2 = 2 * (2 * f_int * act_b + 4) + (2 * f_int + 1) * 4
    p3 = 2 * (f_l * in_b + 4 + f_l * out_b) + (f_l + 1) * 4
    return max(p1, p2, p3)


def _pick_tile(hw_pad, per_col_bytes, vmem_cap):
    budget = int(vmem_cap * 0.35)
    for t in (4096, 2048, 1024, 512, 256, 128):
        if hw_pad % t == 0 and per_col_bytes * t <= budget:
            return t
    return 128  # hw_pad is always a multiple of 128


# ---------------------------------------------------------------- wrapper ---
def _attention_block_forward(g, x, params, eps=_EPS):
    B, F_g, H, W = g.shape
    _, F_l, _, _ = x.shape
    F_int = params["wg"].shape[0]
    HW = H * W
    HW_pad = -(-HW // 128) * 128

    act_dtype = jnp.promote_types(g.dtype, x.dtype)
    out_dtype = x.dtype
    in_b = jnp.dtype(act_dtype).itemsize
    out_b = jnp.dtype(out_dtype).itemsize

    vmem_cap = _vmem_capacity_bytes()
    T = _pick_tile(HW_pad, _per_col_vmem_bytes(F_g, F_l, F_int, in_b, in_b, out_b),
                   vmem_cap)
    n_t = HW_pad // T
    vmem_limit = int(vmem_cap * 0.5)

    g3 = g.reshape(B, F_g, HW)
    x3 = x.reshape(B, F_l, HW)
    if HW_pad != HW:
        g3 = jnp.pad(g3, ((0, 0), (0, 0), (0, HW_pad - HW)))
        x3 = jnp.pad(x3, ((0, 0), (0, 0), (0, HW_pad - HW)))

    tile_in = lambda C: pl.BlockSpec((1, C, T), lambda b, t: (b, 0, t))
    const2 = lambda shp: pl.BlockSpec(shp, lambda b, t: (0, 0))
    stat_spec = pl.BlockSpec((1, F_int, 128), lambda b, t: (b, 0, 0))
    psi_spec = pl.BlockSpec((1, 1, T), lambda b, t: (b, 0, t))
    psum_spec = pl.BlockSpec((1, 1, 128), lambda b, t: (b * n_t + t, 0, 0))
    smem = pl.BlockSpec(memory_space=pltpu.MemorySpace.SMEM)

    wg = params["wg"].astype(jnp.float32)
    wx = params["wx"].astype(jnp.float32)

    # ---- pass 1: convs + per-batch lane-partial channel stats ---------------
    g1f, x1f, sg, sg2, sx, sx2 = pl.pallas_call(
        functools.partial(_conv_stats_kernel, tile=T),
        grid=(B, n_t),
        in_specs=[tile_in(F_g), tile_in(F_l),
                  const2((F_int, F_g)), const2((F_int, F_l))],
        out_specs=[tile_in(F_int), tile_in(F_int)] + [stat_spec] * 4,
        out_shape=[jax.ShapeDtypeStruct((B, F_int, HW_pad), act_dtype)] * 2
                  + [jax.ShapeDtypeStruct((B, F_int, 128), jnp.float32)] * 4,
        compiler_params=pltpu.CompilerParams(
            dimension_semantics=("parallel", "arbitrary"),
            vmem_limit_bytes=vmem_limit),
    )(g3, x3, wg, wx)

    # tiny glue (O(B*F_int*128)): fold batch-stats BN into per-channel affines
    n = jnp.float32(B * HW)  # real element count (padding contributes zeros)

    def fold(s_lane, s2_lane, gamma, beta):
        s = jnp.sum(s_lane, axis=(0, 2))
        s2 = jnp.sum(s2_lane, axis=(0, 2))
        mu = s / n
        # TODO(synk): E[x^2]-E[x]^2 can cancel for large-mean channels; a
        # shifted two-pass variance would be more robust at production B*HW.
        var = jnp.maximum(s2 / n - mu * mu, 0.0)
        a = gamma * jax.lax.rsqrt(var + eps)
        return a, beta - a * mu

    a_g, c_g = fold(sg, sg2, params["gamma_g"], params["beta_g"])
    a_x, c_x = fold(sx, sx2, params["gamma_x"], params["beta_x"])
    a_g_col = a_g[:, None].astype(jnp.float32)                      # (F_int, 1)
    a_x_col = a_x[:, None].astype(jnp.float32)
    bias_col = (c_g + c_x)[:, None].astype(jnp.float32)
    wpsi = params["wpsi"].reshape(1, F_int).astype(jnp.float32)

    # ---- pass 2: psi_pre = Wpsi . LeakyReLU(a_g*g1 + a_x*x1 + bias) ---------
    psi_pre, psum, psum2 = pl.pallas_call(
        functools.partial(_psi_kernel, tile=T, hw=HW, needs_mask=(HW_pad != HW)),
        grid=(B, n_t),
        in_specs=[tile_in(F_int), tile_in(F_int),
                  const2((F_int, 1)), const2((F_int, 1)), const2((F_int, 1)),
                  const2((1, F_int))],
        out_specs=[psi_spec, psum_spec, psum_spec],
        out_shape=[jax.ShapeDtypeStruct((B, 1, HW_pad), jnp.float32),
                   jax.ShapeDtypeStruct((B * n_t, 1, 128), jnp.float32),
                   jax.ShapeDtypeStruct((B * n_t, 1, 128), jnp.float32)],
        compiler_params=pltpu.CompilerParams(
            dimension_semantics=("parallel", "parallel"),
            vmem_limit_bytes=vmem_limit),
    )(g1f, x1f, a_g_col, a_x_col, bias_col, wpsi)

    # tiny glue: single-channel psi BatchNorm affine from the kernel partials
    mu_p = jnp.sum(psum) / n
    var_p = jnp.maximum(jnp.sum(psum2) / n - mu_p * mu_p, 0.0)
    a_p = params["gamma_p"] * jax.lax.rsqrt(var_p + eps)
    c_p = params["beta_p"] - a_p * mu_p
    bn2 = jnp.stack([a_p, c_p]).astype(jnp.float32)                 # (2,)

    # ---- pass 3: out = x * sigmoid(a*psi + c) -------------------------------
    out3 = pl.pallas_call(
        _gate_kernel,
        grid=(B, n_t),
        in_specs=[tile_in(F_l), psi_spec, smem],
        out_specs=tile_in(F_l),
        out_shape=jax.ShapeDtypeStruct((B, F_l, HW_pad), out_dtype),
        compiler_params=pltpu.CompilerParams(
            dimension_semantics=("parallel", "parallel"),
            vmem_limit_bytes=vmem_limit),
    )(x3, psi_pre, bn2)

    if HW_pad != HW:
        out3 = out3[:, :, :HW]
    return out3.reshape(B, F_l, H, W)


attention_block_forward = jax.jit(_attention_block_forward)


# ---------------------------------------------------------------- reference -
def attention_block_reference(g, x, params, eps=_EPS):
    def conv1x1(z, w):                                              # w: (O, I)
        return jnp.einsum("oi,bihw->bohw", w, z)

    def bn(z, gamma, beta):                                         # train-mode BN
        mu = z.mean(axis=(0, 2, 3), keepdims=True)
        var = ((z - mu) ** 2).mean(axis=(0, 2, 3), keepdims=True)
        return (gamma.reshape(1, -1, 1, 1) * (z - mu)
                * jax.lax.rsqrt(var + eps) + beta.reshape(1, -1, 1, 1))

    g1 = bn(conv1x1(g, params["wg"]), params["gamma_g"], params["beta_g"])
    x1 = bn(conv1x1(x, params["wx"]), params["gamma_x"], params["beta_x"])
    s = g1 + x1
    s = jnp.where(s > 0, s, 0.2 * s)                                # LeakyReLU(0.2)
    p = bn(conv1x1(s, params["wpsi"].reshape(1, -1)),
           params["gamma_p"].reshape(1), params["beta_p"].reshape(1))
    return x * jax.nn.sigmoid(p)


if __name__ == "__main__":
    B, F_g, F_l, F_int, H, W = 2, 32, 32, 16, 32, 32                # HW = 1024

    key = jax.random.PRNGKey(0)
    ks = jax.random.split(key, 11)
    params = {
        # 1x1 conv weights stored as (out_channels, in_channels)
        "wg": jax.random.normal(ks[0], (F_int, F_g), jnp.float32) / jnp.sqrt(F_g),
        "wx": jax.random.normal(ks[1], (F_int, F_l), jnp.float32) / jnp.sqrt(F_l),
        "wpsi": jax.random.normal(ks[2], (F_int,), jnp.float32) / jnp.sqrt(F_int),
        # BatchNorm affine params
        "gamma_g": 1.0 + 0.1 * jax.random.normal(ks[3], (F_int,), jnp.float32),
        "beta_g": 0.1 * jax.random.normal(ks[4], (F_int,), jnp.float32),
        "gamma_x": 1.0 + 0.1 * jax.random.normal(ks[5], (F_int,), jnp.float32),
        "beta_x": 0.1 * jax.random.normal(ks[6], (F_int,), jnp.float32),
        "gamma_p": 1.0 + 0.1 * jax.random.normal(ks[7], (), jnp.float32),
        "beta_p": 0.1 * jax.random.normal(ks[8], (), jnp.float32),
    }
    g = jax.random.normal(ks[9], (B, F_g, H, W), jnp.float32)
    x = jax.random.normal(ks[10], (B, F_l, H, W), jnp.float32)

    out = jax.block_until_ready(attention_block_forward(g, x, params))
    ref = attention_block_reference(g, x, params)

    assert out.shape == (B, F_l, H, W)
    max_err = float(jnp.max(jnp.abs(out - ref)))
    assert max_err < 1e-4, f"mismatch vs reference: {max_err}"
    print("KERNEL_OK")
</pallas_src>

<mosaic_0001>
module attributes {stable_mosaic.version = 11 : i64} {
  func.func @_conv_stats_kernel(%arg0: i32, %arg1: i32, %arg2: memref<1x32x1024xf32, #tpu.memory_space<vmem>>, %arg3: memref<1x32x1024xf32, #tpu.memory_space<vmem>>, %arg4: memref<16x32xf32, #tpu.memory_space<vmem>>, %arg5: memref<16x32xf32, #tpu.memory_space<vmem>>, %arg6: memref<1x16x1024xf32, #tpu.memory_space<vmem>>, %arg7: memref<1x16x1024xf32, #tpu.memory_space<vmem>>, %arg8: memref<1x16x128xf32, #tpu.memory_space<vmem>>, %arg9: memref<1x16x128xf32, #tpu.memory_space<vmem>>, %arg10: memref<1x16x128xf32, #tpu.memory_space<vmem>>, %arg11: memref<1x16x128xf32, #tpu.memory_space<vmem>>) attributes {dimension_semantics = [#tpu.dimension_semantics<parallel>, #tpu.dimension_semantics<arbitrary>], iteration_bounds = array<i64: 2, 1>, scalar_prefetch = 0 : i64, scratch_operands = 0 : i64, tpu.core_type = #tpu.core_type<tc>, window_params = [{transform_indices = @transform_0, window_bounds = array<i64: 1, 32, 1024>}, {transform_indices = @transform_1, window_bounds = array<i64: 1, 32, 1024>}, {pipeline_mode = #tpu.pipeline_mode<synchronous>, transform_indices = @transform_2, window_bounds = array<i64: 16, 32>}, {pipeline_mode = #tpu.pipeline_mode<synchronous>, transform_indices = @transform_3, window_bounds = array<i64: 16, 32>}, {transform_indices = @transform_4, window_bounds = array<i64: 1, 16, 1024>}, {transform_indices = @transform_5, window_bounds = array<i64: 1, 16, 1024>}, {transform_indices = @transform_6, window_bounds = array<i64: 1, 16, 128>}, {transform_indices = @transform_7, window_bounds = array<i64: 1, 16, 128>}, {transform_indices = @transform_8, window_bounds = array<i64: 1, 16, 128>}, {transform_indices = @transform_9, window_bounds = array<i64: 1, 16, 128>}]} {
    %c0_i32 = arith.constant 0 : i32
    %0 = arith.cmpi eq, %arg1, %c0_i32 : i32
    %1 = arith.extui %0 : i1 to i32
    %c0_i32_0 = arith.constant 0 : i32
    %2 = arith.cmpi ne, %1, %c0_i32_0 : i32
    scf.if %2 {
      %cst_41 = arith.constant 0.000000e+00 : f32
      %101 = vector.broadcast %cst_41 : f32 to vector<1x16x128xf32>
      %c0_42 = arith.constant 0 : index
      %c0_43 = arith.constant 0 : index
      %c0_44 = arith.constant 0 : index
      %102 = vector.load %arg8[%c0_42, %c0_43, %c0_44] : memref<1x16x128xf32, #tpu.memory_space<vmem>>, vector<1x16x128xf32>
      tpu.vector_store %arg8[%c0_42, %c0_43, %c0_44], %101 {strides = array<i32>} : memref<1x16x128xf32, #tpu.memory_space<vmem>>, vector<1x16x128xf32>,
      %cst_45 = arith.constant 0.000000e+00 : f32
      %103 = vector.broadcast %cst_45 : f32 to vector<1x16x128xf32>
      %c0_46 = arith.constant 0 : index
      %c0_47 = arith.constant 0 : index
      %c0_48 = arith.constant 0 : index
      %104 = vector.load %arg9[%c0_46, %c0_47, %c0_48] : memref<1x16x128xf32, #tpu.memory_space<vmem>>, vector<1x16x128xf32>
      tpu.vector_store %arg9[%c0_46, %c0_47, %c0_48], %103 {strides = array<i32>} : memref<1x16x128xf32, #tpu.memory_space<vmem>>, vector<1x16x128xf32>,
      %cst_49 = arith.constant 0.000000e+00 : f32
      %105 = vector.broadcast %cst_49 : f32 to vector<1x16x128xf32>
      %c0_50 = arith.constant 0 : index
      %c0_51 = arith.constant 0 : index
      %c0_52 = arith.constant 0 : index
      %106 = vector.load %arg10[%c0_50, %c0_51, %c0_52] : memref<1x16x128xf32, #tpu.memory_space<vmem>>, vector<1x16x128xf32>
      tpu.vector_store %arg10[%c0_50, %c0_51, %c0_52], %105 {strides = array<i32>} : memref<1x16x128xf32, #tpu.memory_space<vmem>>, vector<1x16x128xf32>,
      %cst_53 = arith.constant 0.000000e+00 : f32
      %107 = vector.broadcast %cst_53 : f32 to vector<1x16x128xf32>
      %c0_54 = arith.constant 0 : index
      %c0_55 = arith.constant 0 : index
      %c0_56 = arith.constant 0 : index
      %108 = vector.load %arg11[%c0_54, %c0_55, %c0_56] : memref<1x16x128xf32, #tpu.memory_space<vmem>>, vector<1x16x128xf32>
      tpu.vector_store %arg11[%c0_54, %c0_55, %c0_56], %107 {strides = array<i32>} : memref<1x16x128xf32, #tpu.memory_space<vmem>>, vector<1x16x128xf32>,
    } else {
    }
    %c0 = arith.constant 0 : index
    %c0_1 = arith.constant 0 : index
    %c0_2 = arith.constant 0 : index
    %3 = vector.load %arg2[%c0, %c0_1, %c0_2] : memref<1x32x1024xf32, #tpu.memory_space<vmem>>, vector<1x32x1024xf32>
    %4 = vector.shape_cast %3 : vector<1x32x1024xf32> to vector<32x1024xf32>
    %c0_3 = arith.constant 0 : index
    %c0_4 = arith.constant 0 : index
    %c0_5 = arith.constant 0 : index
    %5 = vector.load %arg3[%c0_3, %c0_4, %c0_5] : memref<1x32x1024xf32, #tpu.memory_space<vmem>>, vector<1x32x1024xf32>
    %6 = vector.shape_cast %5 : vector<1x32x1024xf32> to vector<32x1024xf32>
    %c0_6 = arith.constant 0 : index
    %c0_7 = arith.constant 0 : index
    %7 = vector.load %arg4[%c0_6, %c0_7] : memref<16x32xf32, #tpu.memory_space<vmem>>, vector<16x32xf32>
    %cst = arith.constant dense<0.000000e+00> : vector<16x1024xf32>
    %8 = tpu.matmul %7, %4, %cst {dimension_numbers = #tpu.dot_dimension_numbers<[1], [0], [0], [1], [0, 0, 1, 1], [], []>} : vector<16x32xf32>, vector<32x1024xf32>, vector<16x1024xf32> -> vector<16x1024xf32>
    %c0_8 = arith.constant 0 : index
    %c0_9 = arith.constant 0 : index
    %9 = vector.load %arg5[%c0_8, %c0_9] : memref<16x32xf32, #tpu.memory_space<vmem>>, vector<16x32xf32>
    %cst_10 = arith.constant dense<0.000000e+00> : vector<16x1024xf32>
    %10 = tpu.matmul %9, %6, %cst_10 {dimension_numbers = #tpu.dot_dimension_numbers<[1], [0], [0], [1], [0, 0, 1, 1], [], []>} : vector<16x32xf32>, vector<32x1024xf32>, vector<16x1024xf32> -> vector<16x1024xf32>
    %c0_11 = arith.constant 0 : index
    %c0_12 = arith.constant 0 : index
    %c0_13 = arith.constant 0 : index
    %11 = vector.load %arg6[%c0_11, %c0_12, %c0_13] : memref<1x16x1024xf32, #tpu.memory_space<vmem>>, vector<1x16x1024xf32>
    %12 = vector.shape_cast %11 : vector<1x16x1024xf32> to vector<16x1024xf32>
    %13 = vector.shape_cast %8 : vector<16x1024xf32> to vector<1x16x1024xf32>
    tpu.vector_store %arg6[%c0_11, %c0_12, %c0_13], %13 {strides = array<i32>} : memref<1x16x1024xf32, #tpu.memory_space<vmem>>, vector<1x16x1024xf32>,
    %c0_14 = arith.constant 0 : index
    %c0_15 = arith.constant 0 : index
    %c0_16 = arith.constant 0 : index
    %14 = vector.load %arg7[%c0_14, %c0_15, %c0_16] : memref<1x16x1024xf32, #tpu.memory_space<vmem>>, vector<1x16x1024xf32>
    %15 = vector.shape_cast %14 : vector<1x16x1024xf32> to vector<16x1024xf32>
    %16 = vector.shape_cast %10 : vector<16x1024xf32> to vector<1x16x1024xf32>
    tpu.vector_store %arg7[%c0_14, %c0_15, %c0_16], %16 {strides = array<i32>} : memref<1x16x1024xf32, #tpu.memory_space<vmem>>, vector<1x16x1024xf32>,
    %17 = vector.extract_strided_slice %8 {offsets = [0, 0], sizes = [16, 128], strides = [1, 1]} : vector<16x1024xf32> to vector<16x128xf32>
    %18 = arith.mulf %17, %17 : vector<16x128xf32>
    %19 = vector.extract_strided_slice %8 {offsets = [0, 128], sizes = [16, 128], strides = [1, 1]} : vector<16x1024xf32> to vector<16x128xf32>
    %20 = arith.addf %17, %19 : vector<16x128xf32>
    %21 = arith.mulf %19, %19 : vector<16x128xf32>
    %22 = arith.addf %18, %21 : vector<16x128xf32>
    %23 = vector.extract_strided_slice %8 {offsets = [0, 256], sizes = [16, 128], strides = [1, 1]} : vector<16x1024xf32> to vector<16x128xf32>
    %24 = arith.addf %20, %23 : vector<16x128xf32>
    %25 = arith.mulf %23, %23 : vector<16x128xf32>
    %26 = arith.addf %22, %25 : vector<16x128xf32>
    %27 = vector.extract_strided_slice %8 {offsets = [0, 384], sizes = [16, 128], strides = [1, 1]} : vector<16x1024xf32> to vector<16x128xf32>
    %28 = arith.addf %24, %27 : vector<16x128xf32>
    %29 = arith.mulf %27, %27 : vector<16x128xf32>
    %30 = arith.addf %26, %29 : vector<16x128xf32>
    %31 = vector.extract_strided_slice %8 {offsets = [0, 512], sizes = [16, 128], strides = [1, 1]} : vector<16x1024xf32> to vector<16x128xf32>
    %32 = arith.addf %28, %31 : vector<16x128xf32>
    %33 = arith.mulf %31, %31 : vector<16x128xf32>
    %34 = arith.addf %30, %33 : vector<16x128xf32>
    %35 = vector.extract_strided_slice %8 {offsets = [0, 640], sizes = [16, 128], strides = [1, 1]} : vector<16x1024xf32> to vector<16x128xf32>
    %36 = arith.addf %32, %35 : vector<16x128xf32>
    %37 = arith.mulf %35, %35 : vector<16x128xf32>
    %38 = arith.addf %34, %37 : vector<16x128xf32>
    %39 = vector.extract_strided_slice %8 {offsets = [0, 768], sizes = [16, 128], strides = [1, 1]} : vector<16x1024xf32> to vector<16x128xf32>
    %40 = arith.addf %36, %39 : vector<16x128xf32>
    %41 = arith.mulf %39, %39 : vector<16x128xf32>
    %42 = arith.addf %38, %41 : vector<16x128xf32>
    %43 = vector.extract_strided_slice %8 {offsets = [0, 896], sizes = [16, 128], strides = [1, 1]} : vector<16x1024xf32> to vector<16x128xf32>
    %44 = arith.addf %40, %43 : vector<16x128xf32>
    %45 = arith.mulf %43, %43 : vector<16x128xf32>
    %46 = arith.addf %42, %45 : vector<16x128xf32>
    %c0_17 = arith.constant 0 : index
    %c0_18 = arith.constant 0 : index
    %c0_19 = arith.constant 0 : index
    %47 = vector.load %arg8[%c0_17, %c0_18, %c0_19] : memref<1x16x128xf32, #tpu.memory_space<vmem>>, vector<1x16x128xf32>
    %48 = vector.shape_cast %47 : vector<1x16x128xf32> to vector<16x128xf32>
    %49 = arith.addf %48, %44 : vector<16x128xf32>
    %c0_20 = arith.constant 0 : index
    %c0_21 = arith.constant 0 : index
    %c0_22 = arith.constant 0 : index
    %50 = vector.load %arg8[%c0_20, %c0_21, %c0_22] : memref<1x16x128xf32, #tpu.memory_space<vmem>>, vector<1x16x128xf32>
    %51 = vector.shape_cast %50 : vector<1x16x128xf32> to vector<16x128xf32>
    %52 = vector.shape_cast %49 : vector<16x128xf32> to vector<1x16x128xf32>
    tpu.vector_store %arg8[%c0_20, %c0_21, %c0_22], %52 {strides = array<i32>} : memref<1x16x128xf32, #tpu.memory_space<vmem>>, vector<1x16x128xf32>,
    %c0_23 = arith.constant 0 : index
    %c0_24 = arith.constant 0 : index
    %c0_25 = arith.constant 0 : index
    %53 = vector.load %arg9[%c0_23, %c0_24, %c0_25] : memref<1x16x128xf32, #tpu.memory_space<vmem>>, vector<1x16x128xf32>
    %54 = vector.shape_cast %53 : vector<1x16x128xf32> to vector<16x128xf32>
    %55 = arith.addf %54, %46 : vector<16x128xf32>
    %c0_26 = arith.constant 0 : index
    %c0_27 = arith.constant 0 : index
    %c0_28 = arith.constant 0 : index
    %56 = vector.load %arg9[%c0_26, %c0_27, %c0_28] : memref<1x16x128xf32, #tpu.memory_space<vmem>>, vector<1x16x128xf32>
    %57 = vector.shape_cast %56 : vector<1x16x128xf32> to vector<16x128xf32>
    %58 = vector.shape_cast %55 : vector<16x128xf32> to vector<1x16x128xf32>
    tpu.vector_store %arg9[%c0_26, %c0_27, %c0_28], %58 {strides = array<i32>} : memref<1x16x128xf32, #tpu.memory_space<vmem>>, vector<1x16x128xf32>,
    %59 = vector.extract_strided_slice %10 {offsets = [0, 0], sizes = [16, 128], strides = [1, 1]} : vector<16x1024xf32> to vector<16x128xf32>
    %60 = arith.mulf %59, %59 : vector<16x128xf32>
    %61 = vector.extract_strided_slice %10 {offsets = [0, 128], sizes = [16, 128], strides = [1, 1]} : vector<16x1024xf32> to vector<16x128xf32>
    %62 = arith.addf %59, %61 : vector<16x128xf32>
    %63 = arith.mulf %61, %61 : vector<16x128xf32>
    %64 = arith.addf %60, %63 : vector<16x128xf32>
    %65 = vector.extract_strided_slice %10 {offsets = [0, 256], sizes = [16, 128], strides = [1, 1]} : vector<16x1024xf32> to vector<16x128xf32>
    %66 = arith.addf %62, %65 : vector<16x128xf32>
    %67 = arith.mulf %65, %65 : vector<16x128xf32>
    %68 = arith.addf %64, %67 : vector<16x128xf32>
    %69 = vector.extract_strided_slice %10 {offsets = [0, 384], sizes = [16, 128], strides = [1, 1]} : vector<16x1024xf32> to vector<16x128xf32>
    %70 = arith.addf %66, %69 : vector<16x128xf32>
    %71 = arith.mulf %69, %69 : vector<16x128xf32>
    %72 = arith.addf %68, %71 : vector<16x128xf32>
    %73 = vector.extract_strided_slice %10 {offsets = [0, 512], sizes = [16, 128], strides = [1, 1]} : vector<16x1024xf32> to vector<16x128xf32>
    %74 = arith.addf %70, %73 : vector<16x128xf32>
    %75 = arith.mulf %73, %73 : vector<16x128xf32>
    %76 = arith.addf %72, %75 : vector<16x128xf32>
    %77 = vector.extract_strided_slice %10 {offsets = [0, 640], sizes = [16, 128], strides = [1, 1]} : vector<16x1024xf32> to vector<16x128xf32>
    %78 = arith.addf %74, %77 : vector<16x128xf32>
    %79 = arith.mulf %77, %77 : vector<16x128xf32>
    %80 = arith.addf %76, %79 : vector<16x128xf32>
    %81 = vector.extract_strided_slice %10 {offsets = [0, 768], sizes = [16, 128], strides = [1, 1]} : vector<16x1024xf32> to vector<16x128xf32>
    %82 = arith.addf %78, %81 : vector<16x128xf32>
    %83 = arith.mulf %81, %81 : vector<16x128xf32>
    %84 = arith.addf %80, %83 : vector<16x128xf32>
    %85 = vector.extract_strided_slice %10 {offsets = [0, 896], sizes = [16, 128], strides = [1, 1]} : vector<16x1024xf32> to vector<16x128xf32>
    %86 = arith.addf %82, %85 : vector<16x128xf32>
    %87 = arith.mulf %85, %85 : vector<16x128xf32>
    %88 = arith.addf %84, %87 : vector<16x128xf32>
    %c0_29 = arith.constant 0 : index
    %c0_30 = arith.constant 0 : index
    %c0_31 = arith.constant 0 : index
    %89 = vector.load %arg10[%c0_29, %c0_30, %c0_31] : memref<1x16x128xf32, #tpu.memory_space<vmem>>, vector<1x16x128xf32>
    %90 = vector.shape_cast %89 : vector<1x16x128xf32> to vector<16x128xf32>
    %91 = arith.addf %90, %86 : vector<16x128xf32>
    %c0_32 = arith.constant 0 : index
    %c0_33 = arith.constant 0 : index
    %c0_34 = arith.constant 0 : index
    %92 = vector.load %arg10[%c0_32, %c0_33, %c0_34] : memref<1x16x128xf32, #tpu.memory_space<vmem>>, vector<1x16x128xf32>
    %93 = vector.shape_cast %92 : vector<1x16x128xf32> to vector<16x128xf32>
    %94 = vector.shape_cast %91 : vector<16x128xf32> to vector<1x16x128xf32>
    tpu.vector_store %arg10[%c0_32, %c0_33, %c0_34], %94 {strides = array<i32>} : memref<1x16x128xf32, #tpu.memory_space<vmem>>, vector<1x16x128xf32>,
    %c0_35 = arith.constant 0 : index
    %c0_36 = arith.constant 0 : index
    %c0_37 = arith.constant 0 : index
    %95 = vector.load %arg11[%c0_35, %c0_36, %c0_37] : memref<1x16x128xf32, #tpu.memory_space<vmem>>, vector<1x16x128xf32>
    %96 = vector.shape_cast %95 : vector<1x16x128xf32> to vector<16x128xf32>
    %97 = arith.addf %96, %88 : vector<16x128xf32>
    %c0_38 = arith.constant 0 : index
    %c0_39 = arith.constant 0 : index
    %c0_40 = arith.constant 0 : index
    %98 = vector.load %arg11[%c0_38, %c0_39, %c0_40] : memref<1x16x128xf32, #tpu.memory_space<vmem>>, vector<1x16x128xf32>
    %99 = vector.shape_cast %98 : vector<1x16x128xf32> to vector<16x128xf32>
    %100 = vector.shape_cast %97 : vector<16x128xf32> to vector<1x16x128xf32>
    tpu.vector_store %arg11[%c0_38, %c0_39, %c0_40], %100 {strides = array<i32>} : memref<1x16x128xf32, #tpu.memory_space<vmem>>, vector<1x16x128xf32>,
    return
  }
  func.func @transform_0(%arg0: i32, %arg1: i32) -> (i32, i32, i32) {
    %c0_i32 = arith.constant 0 : i32
    %c0_i32_0 = arith.constant 0 : i32
    return %arg0, %c0_i32, %arg1 : i32, i32, i32
  }
  func.func @transform_1(%arg0: i32, %arg1: i32) -> (i32, i32, i32) {
    %c0_i32 = arith.constant 0 : i32
    %c0_i32_0 = arith.constant 0 : i32
    return %arg0, %c0_i32, %arg1 : i32, i32, i32
  }
  func.func @transform_2(%arg0: i32, %arg1: i32) -> (i32, i32) {
    %c0_i32 = arith.constant 0 : i32
    %c0_i32_0 = arith.constant 0 : i32
    %c0_i32_1 = arith.constant 0 : i32
    return %c0_i32, %c0_i32_0 : i32, i32
  }
  func.func @transform_3(%arg0: i32, %arg1: i32) -> (i32, i32) {
    %c0_i32 = arith.constant 0 : i32
    %c0_i32_0 = arith.constant 0 : i32
    %c0_i32_1 = arith.constant 0 : i32
    return %c0_i32, %c0_i32_0 : i32, i32
  }
  func.func @transform_4(%arg0: i32, %arg1: i32) -> (i32, i32, i32) {
    %c0_i32 = arith.constant 0 : i32
    %c0_i32_0 = arith.constant 0 : i32
    return %arg0, %c0_i32, %arg1 : i32, i32, i32
  }
  func.func @transform_5(%arg0: i32, %arg1: i32) -> (i32, i32, i32) {
    %c0_i32 = arith.constant 0 : i32
    %c0_i32_0 = arith.constant 0 : i32
    return %arg0, %c0_i32, %arg1 : i32, i32, i32
  }
  func.func @transform_6(%arg0: i32, %arg1: i32) -> (i32, i32, i32) {
    %c0_i32 = arith.constant 0 : i32
    %c0_i32_0 = arith.constant 0 : i32
    %c0_i32_1 = arith.constant 0 : i32
    return %arg0, %c0_i32, %c0_i32_0 : i32, i32, i32
  }
  func.func @transform_7(%arg0: i32, %arg1: i32) -> (i32, i32, i32) {
    %c0_i32 = arith.constant 0 : i32
    %c0_i32_0 = arith.constant 0 : i32
    %c0_i32_1 = arith.constant 0 : i32
    return %arg0, %c0_i32, %c0_i32_0 : i32, i32, i32
  }
  func.func @transform_8(%arg0: i32, %arg1: i32) -> (i32, i32, i32) {
    %c0_i32 = arith.constant 0 : i32
    %c0_i32_0 = arith.constant 0 : i32
    %c0_i32_1 = arith.constant 0 : i32
    return %arg0, %c0_i32, %c0_i32_0 : i32, i32, i32
  }
  func.func @transform_9(%arg0: i32, %arg1: i32) -> (i32, i32, i32) {
    %c0_i32 = arith.constant 0 : i32
    %c0_i32_0 = arith.constant 0 : i32
    %c0_i32_1 = arith.constant 0 : i32
    return %arg0, %c0_i32, %c0_i32_0 : i32, i32, i32
  }
}

module attributes {stable_mosaic.version = 11 : i64} {
  func.func @_psi_kernel(%arg0: i32, %arg1: i32, %arg2: memref<1x16x1024xf32, #tpu.memory_space<vmem>>, %arg3: memref<1x16x1024xf32, #tpu.memory_space<vmem>>, %arg4: memref<16x1xf32, #tpu.memory_space<vmem>>, %arg5: memref<16x1xf32, #tpu.memory_space<vmem>>, %arg6: memref<16x1xf32, #tpu.memory_space<vmem>>, %arg7: memref<1x16xf32, #tpu.memory_space<vmem>>, %arg8: memref<1x1x1024xf32, #tpu.memory_space<vmem>>, %arg9: memref<1x1x128xf32, #tpu.memory_space<vmem>>, %arg10: memref<1x1x128xf32, #tpu.memory_space<vmem>>) attributes {dimension_semantics = [#tpu.dimension_semantics<parallel>, #tpu.dimension_semantics<parallel>], iteration_bounds = array<i64: 2, 1>, scalar_prefetch = 0 : i64, scratch_operands = 0 : i64, tpu.core_type = #tpu.core_type<tc>, window_params = [{transform_indices = @transform_0, window_bounds = array<i64: 1, 16, 1024>}, {transform_indices = @transform_1, window_bounds = array<i64: 1, 16, 1024>}, {pipeline_mode = #tpu.pipeline_mode<synchronous>, transform_indices = @transform_2, window_bounds = array<i64: 16, 1>}, {pipeline_mode = #tpu.pipeline_mode<synchronous>, transform_indices = @transform_3, window_bounds = array<i64: 16, 1>}, {pipeline_mode = #tpu.pipeline_mode<synchronous>, transform_indices = @transform_4, window_bounds = array<i64: 16, 1>}, {pipeline_mode = #tpu.pipeline_mode<synchronous>, transform_indices = @transform_5, window_bounds = array<i64: 1, 16>}, {transform_indices = @transform_6, window_bounds = array<i64: 1, 1, 1024>}, {transform_indices = @transform_7, window_bounds = array<i64: 1, 1, 128>}, {transform_indices = @transform_8, window_bounds = array<i64: 1, 1, 128>}]} {
    %c0 = arith.constant 0 : index
    %c0_0 = arith.constant 0 : index
    %c0_1 = arith.constant 0 : index
    %0 = vector.load %arg2[%c0, %c0_0, %c0_1] : memref<1x16x1024xf32, #tpu.memory_space<vmem>>, vector<1x16x1024xf32>
    %1 = vector.shape_cast %0 : vector<1x16x1024xf32> to vector<16x1024xf32>
    %c0_2 = arith.constant 0 : index
    %c0_3 = arith.constant 0 : index
    %c0_4 = arith.constant 0 : index
    %2 = vector.load %arg3[%c0_2, %c0_3, %c0_4] : memref<1x16x1024xf32, #tpu.memory_space<vmem>>, vector<1x16x1024xf32>
    %3 = vector.shape_cast %2 : vector<1x16x1024xf32> to vector<16x1024xf32>
    %c0_5 = arith.constant 0 : index
    %c0_6 = arith.constant 0 : index
    %4 = vector.load %arg4[%c0_5, %c0_6] : memref<16x1xf32, #tpu.memory_space<vmem>>, vector<16x1xf32>
    %5 = vector.broadcast %4 : vector<16x1xf32> to vector<16x1024xf32>
    %6 = arith.mulf %5, %1 : vector<16x1024xf32>
    %c0_7 = arith.constant 0 : index
    %c0_8 = arith.constant 0 : index
    %7 = vector.load %arg5[%c0_7, %c0_8] : memref<16x1xf32, #tpu.memory_space<vmem>>, vector<16x1xf32>
    %8 = vector.broadcast %7 : vector<16x1xf32> to vector<16x1024xf32>
    %9 = arith.mulf %8, %3 : vector<16x1024xf32>
    %10 = arith.addf %6, %9 : vector<16x1024xf32>
    %c0_9 = arith.constant 0 : index
    %c0_10 = arith.constant 0 : index
    %11 = vector.load %arg6[%c0_9, %c0_10] : memref<16x1xf32, #tpu.memory_space<vmem>>, vector<16x1xf32>
    %12 = vector.broadcast %11 : vector<16x1xf32> to vector<16x1024xf32>
    %13 = arith.addf %10, %12 : vector<16x1024xf32>
    %cst = arith.constant 2.000000e-01 : f32
    %14 = vector.broadcast %cst : f32 to vector<16x1024xf32>
    %15 = arith.mulf %14, %13 : vector<16x1024xf32>
    %16 = arith.maximumf %13, %15 : vector<16x1024xf32>
    %c0_11 = arith.constant 0 : index
    %c0_12 = arith.constant 0 : index
    %17 = vector.load %arg7[%c0_11, %c0_12] : memref<1x16xf32, #tpu.memory_space<vmem>>, vector<1x16xf32>
    %cst_13 = arith.constant dense<0.000000e+00> : vector<1x1024xf32>
    %18 = tpu.matmul %17, %16, %cst_13 {dimension_numbers = #tpu.dot_dimension_numbers<[1], [0], [0], [1], [0, 0, 1, 1], [], []>} : vector<1x16xf32>, vector<16x1024xf32>, vector<1x1024xf32> -> vector<1x1024xf32>
    %c0_14 = arith.constant 0 : index
    %c0_15 = arith.constant 0 : index
    %c0_16 = arith.constant 0 : index
    %19 = vector.load %arg8[%c0_14, %c0_15, %c0_16] : memref<1x1x1024xf32, #tpu.memory_space<vmem>>, vector<1x1x1024xf32>
    %20 = vector.shape_cast %19 : vector<1x1x1024xf32> to vector<1x1024xf32>
    %21 = vector.shape_cast %18 : vector<1x1024xf32> to vector<1x1x1024xf32>
    tpu.vector_store %arg8[%c0_14, %c0_15, %c0_16], %21 {strides = array<i32>} : memref<1x1x1024xf32, #tpu.memory_space<vmem>>, vector<1x1x1024xf32>,
    %22 = vector.extract_strided_slice %18 {offsets = [0, 0], sizes = [1, 128], strides = [1, 1]} : vector<1x1024xf32> to vector<1x128xf32>
    %23 = vector.extract_strided_slice %18 {offsets = [0, 128], sizes = [1, 128], strides = [1, 1]} : vector<1x1024xf32> to vector<1x128xf32>
    %24 = arith.addf %22, %23 : vector<1x128xf32>
    %25 = vector.extract_strided_slice %18 {offsets = [0, 256], sizes = [1, 128], strides = [1, 1]} : vector<1x1024xf32> to vector<1x128xf32>
    %26 = arith.addf %24, %25 : vector<1x128xf32>
    %27 = vector.extract_strided_slice %18 {offsets = [0, 384], sizes = [1, 128], strides = [1, 1]} : vector<1x1024xf32> to vector<1x128xf32>
    %28 = arith.addf %26, %27 : vector<1x128xf32>
    %29 = vector.extract_strided_slice %18 {offsets = [0, 512], sizes = [1, 128], strides = [1, 1]} : vector<1x1024xf32> to vector<1x128xf32>
    %30 = arith.addf %28, %29 : vector<1x128xf32>
    %31 = vector.extract_strided_slice %18 {offsets = [0, 640], sizes = [1, 128], strides = [1, 1]} : vector<1x1024xf32> to vector<1x128xf32>
    %32 = arith.addf %30, %31 : vector<1x128xf32>
    %33 = vector.extract_strided_slice %18 {offsets = [0, 768], sizes = [1, 128], strides = [1, 1]} : vector<1x1024xf32> to vector<1x128xf32>
    %34 = arith.addf %32, %33 : vector<1x128xf32>
    %35 = vector.extract_strided_slice %18 {offsets = [0, 896], sizes = [1, 128], strides = [1, 1]} : vector<1x1024xf32> to vector<1x128xf32>
    %36 = arith.addf %34, %35 : vector<1x128xf32>
    %c0_17 = arith.constant 0 : index
    %c0_18 = arith.constant 0 : index
    %c0_19 = arith.constant 0 : index
    %37 = vector.load %arg9[%c0_17, %c0_18, %c0_19] : memref<1x1x128xf32, #tpu.memory_space<vmem>>, vector<1x1x128xf32>
    %38 = vector.shape_cast %37 : vector<1x1x128xf32> to vector<1x128xf32>
    %39 = vector.shape_cast %36 : vector<1x128xf32> to vector<1x1x128xf32>
    tpu.vector_store %arg9[%c0_17, %c0_18, %c0_19], %39 {strides = array<i32>} : memref<1x1x128xf32, #tpu.memory_space<vmem>>, vector<1x1x128xf32>,
    %40 = arith.mulf %18, %18 : vector<1x1024xf32>
    %41 = vector.extract_strided_slice %40 {offsets = [0, 0], sizes = [1, 128], strides = [1, 1]} : vector<1x1024xf32> to vector<1x128xf32>
    %42 = vector.extract_strided_slice %40 {offsets = [0, 128], sizes = [1, 128], strides = [1, 1]} : vector<1x1024xf32> to vector<1x128xf32>
    %43 = arith.addf %41, %42 : vector<1x128xf32>
    %44 = vector.extract_strided_slice %40 {offsets = [0, 256], sizes = [1, 128], strides = [1, 1]} : vector<1x1024xf32> to vector<1x128xf32>
    %45 = arith.addf %43, %44 : vector<1x128xf32>
    %46 = vector.extract_strided_slice %40 {offsets = [0, 384], sizes = [1, 128], strides = [1, 1]} : vector<1x1024xf32> to vector<1x128xf32>
    %47 = arith.addf %45, %46 : vector<1x128xf32>
    %48 = vector.extract_strided_slice %40 {offsets = [0, 512], sizes = [1, 128], strides = [1, 1]} : vector<1x1024xf32> to vector<1x128xf32>
    %49 = arith.addf %47, %48 : vector<1x128xf32>
    %50 = vector.extract_strided_slice %40 {offsets = [0, 640], sizes = [1, 128], strides = [1, 1]} : vector<1x1024xf32> to vector<1x128xf32>
    %51 = arith.addf %49, %50 : vector<1x128xf32>
    %52 = vector.extract_strided_slice %40 {offsets = [0, 768], sizes = [1, 128], strides = [1, 1]} : vector<1x1024xf32> to vector<1x128xf32>
    %53 = arith.addf %51, %52 : vector<1x128xf32>
    %54 = vector.extract_strided_slice %40 {offsets = [0, 896], sizes = [1, 128], strides = [1, 1]} : vector<1x1024xf32> to vector<1x128xf32>
    %55 = arith.addf %53, %54 : vector<1x128xf32>
    %c0_20 = arith.constant 0 : index
    %c0_21 = arith.constant 0 : index
    %c0_22 = arith.constant 0 : index
    %56 = vector.load %arg10[%c0_20, %c0_21, %c0_22] : memref<1x1x128xf32, #tpu.memory_space<vmem>>, vector<1x1x128xf32>
    %57 = vector.shape_cast %56 : vector<1x1x128xf32> to vector<1x128xf32>
    %58 = vector.shape_cast %55 : vector<1x128xf32> to vector<1x1x128xf32>
    tpu.vector_store %arg10[%c0_20, %c0_21, %c0_22], %58 {strides = array<i32>} : memref<1x1x128xf32, #tpu.memory_space<vmem>>, vector<1x1x128xf32>,
    return
  }
  func.func @transform_0(%arg0: i32, %arg1: i32) -> (i32, i32, i32) {
    %c0_i32 = arith.constant 0 : i32
    %c0_i32_0 = arith.constant 0 : i32
    return %arg0, %c0_i32, %arg1 : i32, i32, i32
  }
  func.func @transform_1(%arg0: i32, %arg1: i32) -> (i32, i32, i32) {
    %c0_i32 = arith.constant 0 : i32
    %c0_i32_0 = arith.constant 0 : i32
    return %arg0, %c0_i32, %arg1 : i32, i32, i32
  }
  func.func @transform_2(%arg0: i32, %arg1: i32) -> (i32, i32) {
    %c0_i32 = arith.constant 0 : i32
    %c0_i32_0 = arith.constant 0 : i32
    %c0_i32_1 = arith.constant 0 : i32
    return %c0_i32, %c0_i32_0 : i32, i32
  }
  func.func @transform_3(%arg0: i32, %arg1: i32) -> (i32, i32) {
    %c0_i32 = arith.constant 0 : i32
    %c0_i32_0 = arith.constant 0 : i32
    %c0_i32_1 = arith.constant 0 : i32
    return %c0_i32, %c0_i32_0 : i32, i32
  }
  func.func @transform_4(%arg0: i32, %arg1: i32) -> (i32, i32) {
    %c0_i32 = arith.constant 0 : i32
    %c0_i32_0 = arith.constant 0 : i32
    %c0_i32_1 = arith.constant 0 : i32
    return %c0_i32, %c0_i32_0 : i32, i32
  }
  func.func @transform_5(%arg0: i32, %arg1: i32) -> (i32, i32) {
    %c0_i32 = arith.constant 0 : i32
    %c0_i32_0 = arith.constant 0 : i32
    %c0_i32_1 = arith.constant 0 : i32
    return %c0_i32, %c0_i32_0 : i32, i32
  }
  func.func @transform_6(%arg0: i32, %arg1: i32) -> (i32, i32, i32) {
    %c0_i32 = arith.constant 0 : i32
    %c0_i32_0 = arith.constant 0 : i32
    return %arg0, %c0_i32, %arg1 : i32, i32, i32
  }
  func.func @transform_7(%arg0: i32, %arg1: i32) -> (i32, i32, i32) {
    %c1_i32 = arith.constant 1 : i32
    %0 = arith.muli %arg0, %c1_i32 : i32
    %1 = arith.addi %0, %arg1 : i32
    %c0_i32 = arith.constant 0 : i32
    %c0_i32_0 = arith.constant 0 : i32
    %c0_i32_1 = arith.constant 0 : i32
    return %1, %c0_i32, %c0_i32_0 : i32, i32, i32
  }
  func.func @transform_8(%arg0: i32, %arg1: i32) -> (i32, i32, i32) {
    %c1_i32 = arith.constant 1 : i32
    %0 = arith.muli %arg0, %c1_i32 : i32
    %1 = arith.addi %0, %arg1 : i32
    %c0_i32 = arith.constant 0 : i32
    %c0_i32_0 = arith.constant 0 : i32
    %c0_i32_1 = arith.constant 0 : i32
    return %1, %c0_i32, %c0_i32_0 : i32, i32, i32
  }
}

module attributes {stable_mosaic.version = 11 : i64} {
  func.func @_gate_kernel(%arg0: i32, %arg1: i32, %arg2: memref<1x32x1024xf32, #tpu.memory_space<vmem>>, %arg3: memref<1x1x1024xf32, #tpu.memory_space<vmem>>, %arg4: memref<2xf32, #tpu.memory_space<smem>>, %arg5: memref<1x32x1024xf32, #tpu.memory_space<vmem>>) attributes {dimension_semantics = [#tpu.dimension_semantics<parallel>, #tpu.dimension_semantics<parallel>], iteration_bounds = array<i64: 2, 1>, scalar_prefetch = 0 : i64, scratch_operands = 0 : i64, tpu.core_type = #tpu.core_type<tc>, window_params = [{transform_indices = @transform_0, window_bounds = array<i64: 1, 32, 1024>}, {transform_indices = @transform_1, window_bounds = array<i64: 1, 1, 1024>}, {transform_indices = @transform_2, window_bounds = array<i64: 2>}, {transform_indices = @transform_3, window_bounds = array<i64: 1, 32, 1024>}]} {
    %c0 = arith.constant 0 : index
    %0 = memref.load %arg4[%c0] : memref<2xf32, #tpu.memory_space<smem>>
    %c1 = arith.constant 1 : index
    %1 = memref.load %arg4[%c1] : memref<2xf32, #tpu.memory_space<smem>>
    %c0_0 = arith.constant 0 : index
    %c0_1 = arith.constant 0 : index
    %c0_2 = arith.constant 0 : index
    %2 = vector.load %arg3[%c0_0, %c0_1, %c0_2] : memref<1x1x1024xf32, #tpu.memory_space<vmem>>, vector<1x1x1024xf32>
    %3 = vector.shape_cast %2 : vector<1x1x1024xf32> to vector<1x1024xf32>
    %4 = vector.broadcast %0 : f32 to vector<1x1024xf32>
    %5 = arith.mulf %4, %3 : vector<1x1024xf32>
    %6 = vector.broadcast %1 : f32 to vector<1x1024xf32>
    %7 = arith.addf %5, %6 : vector<1x1024xf32>
    %8 = arith.negf %7 : vector<1x1024xf32>
    %9 = math.exp %8 : vector<1x1024xf32>
    %cst = arith.constant 1.000000e+00 : f32
    %10 = vector.broadcast %cst : f32 to vector<1x1024xf32>
    %11 = arith.addf %10, %9 : vector<1x1024xf32>
    %12 = arith.divf %10, %11 : vector<1x1024xf32>
    %c0_3 = arith.constant 0 : index
    %c0_4 = arith.constant 0 : index
    %c0_5 = arith.constant 0 : index
    %13 = vector.load %arg2[%c0_3, %c0_4, %c0_5] : memref<1x32x1024xf32, #tpu.memory_space<vmem>>, vector<1x32x1024xf32>
    %14 = vector.shape_cast %13 : vector<1x32x1024xf32> to vector<32x1024xf32>
    %15 = vector.broadcast %12 : vector<1x1024xf32> to vector<32x1024xf32>
    %16 = arith.mulf %14, %15 : vector<32x1024xf32>
    %c0_6 = arith.constant 0 : index
    %c0_7 = arith.constant 0 : index
    %c0_8 = arith.constant 0 : index
    %17 = vector.load %arg5[%c0_6, %c0_7, %c0_8] : memref<1x32x1024xf32, #tpu.memory_space<vmem>>, vector<1x32x1024xf32>
    %18 = vector.shape_cast %17 : vector<1x32x1024xf32> to vector<32x1024xf32>
    %19 = vector.shape_cast %16 : vector<32x1024xf32> to vector<1x32x1024xf32>
    tpu.vector_store %arg5[%c0_6, %c0_7, %c0_8], %19 {strides = array<i32>} : memref<1x32x1024xf32, #tpu.memory_space<vmem>>, vector<1x32x1024xf32>,
    return
  }
  func.func @transform_0(%arg0: i32, %arg1: i32) -> (i32, i32, i32) {
    %c0_i32 = arith.constant 0 : i32
    %c0_i32_0 = arith.constant 0 : i32
    return %arg0, %c0_i32, %arg1 : i32, i32, i32
  }
  func.func @transform_1(%arg0: i32, %arg1: i32) -> (i32, i32, i32) {
    %c0_i32 = arith.constant 0 : i32
    %c0_i32_0 = arith.constant 0 : i32
    return %arg0, %c0_i32, %arg1 : i32, i32, i32
  }
  func.func @transform_2(%arg0: i32, %arg1: i32) -> i32 {
    %c0_i32 = arith.constant 0 : i32
    %c0_i32_0 = arith.constant 0 : i32
    return %c0_i32 : i32
  }
  func.func @transform_3(%arg0: i32, %arg1: i32) -> (i32, i32, i32) {
    %c0_i32 = arith.constant 0 : i32
    %c0_i32_0 = arith.constant 0 : i32
    return %arg0, %c0_i32, %arg1 : i32, i32, i32
  }
}

</mosaic_0001>

<bundles_post_ra>
// kernel: _attention_block_forward.3
= control target key start
LH: loop header
LB: loop body
LE: loop exit
PB: predicated region body
PF: predicated region fallthrough
CT: control target
= control target key end

     0   :  { %s1534_s30 = smov 0   ;;  %s1536_s10 = smov 0   ;;  %s1772_s0 = inlined_call_operand.vmem [shape: f32[2,32,1024], index: 0, kind: input, shape index: {}]   ;;  %s1773_s1 = inlined_call_operand.vmem [shape: f32[2,32,1024], index: 1, kind: input, shape index: {}]   ;;  %s1774_s2 = inlined_call_operand.vmem [shape: f32[16,32], index: 2, kind: input, shape index: {}]   ;;  %s1775_s3 = inlined_call_operand.vmem [shape: f32[16,32], index: 3, kind: input, shape index: {}]   ;;  %s1776_s4 = inlined_call_operand.vmem [shape: f32[2,16,1024], index: 4, kind: output, shape index: {0}]   ;;  %s1777_s5 = inlined_call_operand.vmem [shape: f32[2,16,1024], index: 5, kind: output, shape index: {1}]   ;;  %s1778_s6 = inlined_call_operand.vmem [shape: f32[2,16,128], index: 6, kind: output, shape index: {2}]   ;;  %s1779_s7 = inlined_call_operand.vmem [shape: f32[2,16,128], index: 7, kind: output, shape index: {3}]   ;;  %s1780_s8 = inlined_call_operand.vmem [shape: f32[2,16,128], index: 8, kind: output, shape index: {4}]   ;;  %s1781_s9 = inlined_call_operand.vmem [shape: f32[2,16,128], index: 9, kind: output, shape index: {5}]  }
   0x1   :  { %s1538_s11 = smov 0  }
   0x2 LB: > { %s32_s12 = sadd.s32 1, %s1478_s10  ;;  %p1376_p0 = scmp.ge.s32.totalorder %s1482_s11, 1  ;;  %s1482_s11 = sphi %s1538_s11, %s20_s11   ;;  %s1478_s10 = sphi %s1536_s10, %s1783_s10   ;;  %s1474_s30 = sphi %s1534_s30, %s1782_s30  }
   0x3   : > { %p34_p1 = scmp.ge.s32.totalorder %s32_s12, 2  ;;  %p338_p2 = scmp.lt.s32.totalorder %s1482_s11, 3 }
   0x5   : > { %s1785_s12 = smov (%p34_p1, %s32_s12), 0  ;;  %p339_p3 = pnand %p1376_p0, %p338_p2 }
   0x6   : > { %p421_p4 = scmp.lt.s32.totalorder (!%p339_p3), %s1474_s30, 1 }
   0x7   : > { %342 = sbr.rel (%p339_p3) target bundleno = 219 (0xdb), region = 36 }
   0xc   : > { %s1787_s30 = smov (!%p421_p4, %s1474_s30), 1  ;;  %v1579_v14 = vld [vmem:[%s1774_s2] sm:$0xff]  ;;  %vm558_vm0 = vcmask 261120   ;;  %v1604_v27 = vld [vmem:[%s1774_s2 + $0x8] sm:$0xff] }
   0xd   : > { %s1427_s13 = sshll.u32 %s1787_s30, 8  ;;  %s1429_s28 = sshll.u32 %s1787_s30, 7 }
   0xe   : > { %s1560_s16 = scalar_lea.vmem %s1772_s0, %s1427_s13  ;;  %s1613_s23 = scalar_lea.vmem %s1773_s1, %s1427_s13 }
   0xf   : > { %v516_v0 = vld [vmem:[%s1560_s16 + $0xc0] sm:$0xff]  ;;  %v518_v1 = vld [vmem:[%s1560_s16 + $0xd0] sm:$0xff]  ;;  %v517_v3 = vld [vmem:[%s1560_s16 + $0xc8] sm:$0xff]  ;;  %s1703_s14 = scalar_lea.vmem %s1776_s4, %s1429_s28  ;;  %s1717_s15 = sshll.u32 %s1787_s30, 4 }
  0x10   : > { %v508_v2 = vld [vmem:[%s1560_s16 + $0x80] sm:$0xff]  ;;  %577 = vmatpush.msra.mxu0 %v516_v0  ;;  %623 = vmatpush.msra.mxu2 %v518_v1  ;;  %v510_v4 = vld [vmem:[%s1560_s16 + $0x90] sm:$0xff]  ;;  %v519_v5 = vld [vmem:[%s1560_s16 + $0xd8] sm:$0xff]  ;;  %s464_s18 = scalar_lea.vmem %s1778_s6, %s1717_s15  ;;  %s469_s21 = scalar_lea.vmem %s1779_s7, %s1717_s15 }
  0x11   : > { %600 = vmatpush.msra.mxu1 %v517_v3  ;;  %646 = vmatpush.msra.mxu3 %v519_v5  ;;  %v500_v6 = vld [vmem:[%s1560_s16 + $0x40] sm:$0xff]  ;;  %v509_v7 = vld [vmem:[%s1560_s16 + $0x88] sm:$0xff]  ;;  %v502_v8 = vld [vmem:[%s1560_s16 + $0x50] sm:$0xff]  ;;  %s1735_s24 = scalar_lea.vmem %s1777_s5, %s1429_s28  ;;  %s474_s26 = scalar_lea.vmem %s1780_s8, %s1717_s15 }
  0x12   : > { %578 = vmatpush.msra.mxu0 %v508_v2  ;;  %624 = vmatpush.msra.mxu2 %v510_v4  ;;  %v511_v9 = vld [vmem:[%s1560_s16 + $0x98] sm:$0xff]  ;;  %v501_v10 = vld [vmem:[%s1560_s16 + $0x48] sm:$0xff]  ;;  %v492_v11 = vld [vmem:[%s1560_s16] sm:$0xff]  ;;  %s479_s29 = scalar_lea.vmem %s1781_s9, %s1717_s15 }
  0x13   : > { %601 = vmatpush.msra.mxu1 %v509_v7  ;;  %647 = vmatpush.msra.mxu3 %v511_v9  ;;  %v494_v12 = vld [vmem:[%s1560_s16 + $0x10] sm:$0xff]  ;;  %v503_v13 = vld [vmem:[%s1560_s16 + $0x58] sm:$0xff]  ;;  %v493_v16 = vld [vmem:[%s1560_s16 + $0x8] sm:$0xff] }
  0x14   : > { %579 = vmatpush.msra.mxu0 %v500_v6  ;;  %625 = vmatpush.msra.mxu2 %v502_v8  ;;  %v522_v15 = vld [vmem:[%s1560_s16 + $0xf0] sm:$0xff]  ;;  %v495_v17 = vld [vmem:[%s1560_s16 + $0x18] sm:$0xff]  ;;  %v520_v18 = vld [vmem:[%s1560_s16 + $0xe0] sm:$0xff] }
  0x15   : > { %602 = vmatpush.msra.mxu1 %v501_v10  ;;  %648 = vmatpush.msra.mxu3 %v503_v13  ;;  %v523_v19 = vld [vmem:[%s1560_s16 + $0xf8] sm:$0xff]  ;;  %v521_v20 = vld [vmem:[%s1560_s16 + $0xe8] sm:$0xff]  ;;  %v514_v21 = vld [vmem:[%s1560_s16 + $0xb0] sm:$0xff] }
  0x16   : > { %580 = vmatpush.msra.mxu0 %v492_v11  ;;  %626 = vmatpush.msra.mxu2 %v494_v12  ;;  %v512_v22 = vld [vmem:[%s1560_s16 + $0xa0] sm:$0xff]  ;;  %v515_v23 = vld [vmem:[%s1560_s16 + $0xb8] sm:$0xff]  ;;  %v513_v24 = vld [vmem:[%s1560_s16 + $0xa8] sm:$0xff] }
  0x17   : > { %1393 = vmatmul.msk.f32.vlgmr.msra.gmra.mxu0 %vm558_vm0, %v1579_v14  ;;  %1397 = vmatmul.msk.f32.vlgmr.msra.gmra.mxu2 %vm558_vm0, %v1579_v14  ;;  %v506_v25 = vld [vmem:[%s1560_s16 + $0x70] sm:$0xff]  ;;  %v504_v26 = vld [vmem:[%s1560_s16 + $0x60] sm:$0xff]  ;;  %v507_v28 = vld [vmem:[%s1560_s16 + $0x78] sm:$0xff] }
  0x18   : > { %715 = vmatpush.msrb.mxu2 %v522_v15  ;;  %603 = vmatpush.msra.mxu1 %v493_v16  ;;  %v505_v29 = vld [vmem:[%s1560_s16 + $0x68] sm:$0xff]  ;;  %v498_v30 = vld [vmem:[%s1560_s16 + $0x30] sm:$0xff]  ;;  %v496_v31 = vld [vmem:[%s1560_s16 + $0x20] sm:$0xff] }
  0x19   : > { %649 = vmatpush.msra.mxu3 %v495_v17  ;;  %1395 = vmatmul.msk.f32.vlgmr.msra.gmra.mxu1 %vm558_vm0, %v1579_v14  ;;  %v499_v32 = vld [vmem:[%s1560_s16 + $0x38] sm:$0xff]  ;;  %v497_v33 = vld [vmem:[%s1560_s16 + $0x28] sm:$0xff]  ;;  %v550_v34 = vld [vmem:[%s1613_s23 + $0xd0] sm:$0xff] }
  0x1a   : > { %1399 = vmatmul.msk.f32.vlgmr.msra.gmra.mxu3 %vm558_vm0, %v1579_v14  ;;  %669 = vmatpush.msrb.mxu0 %v520_v18  ;;  %v548_v35 = vld [vmem:[%s1613_s23 + $0xc0] sm:$0xff]  ;;  %v551_v36 = vld [vmem:[%s1613_s23 + $0xd8] sm:$0xff]  ;;  %v549_v37 = vld [vmem:[%s1613_s23 + $0xc8] sm:$0xff] }
  0x1b   : > { %738 = vmatpush.msrb.mxu3 %v523_v19  ;;  %692 = vmatpush.msrb.mxu1 %v521_v20  ;;  %v542_v38 = vld [vmem:[%s1613_s23 + $0x90] sm:$0xff]  ;;  %v540_v39 = vld [vmem:[%s1613_s23 + $0x80] sm:$0xff]  ;;  %v543_v40 = vld [vmem:[%s1613_s23 + $0x98] sm:$0xff] }
  0x1c   : > { %716 = vmatpush.msrb.mxu2 %v514_v21  ;;  %670 = vmatpush.msrb.mxu0 %v512_v22  ;;  %v541_v41 = vld [vmem:[%s1613_s23 + $0x88] sm:$0xff]  ;;  %v534_v42 = vld [vmem:[%s1613_s23 + $0x50] sm:$0xff]  ;;  %v532_v43 = vld [vmem:[%s1613_s23 + $0x40] sm:$0xff] }
  0x1d   : > { %739 = vmatpush.msrb.mxu3 %v515_v23  ;;  %693 = vmatpush.msrb.mxu1 %v513_v24  ;;  %v535_v44 = vld [vmem:[%s1613_s23 + $0x58] sm:$0xff]  ;;  %v533_v45 = vld [vmem:[%s1613_s23 + $0x48] sm:$0xff]  ;;  %v526_v46 = vld [vmem:[%s1613_s23 + $0x10] sm:$0xff] }
  0x1e   : > { %717 = vmatpush.msrb.mxu2 %v506_v25  ;;  %671 = vmatpush.msrb.mxu0 %v504_v26  ;;  %v524_v47 = vld [vmem:[%s1613_s23] sm:$0xff]  ;;  %v527_v48 = vld [vmem:[%s1613_s23 + $0x18] sm:$0xff]  ;;  %v525_v49 = vld [vmem:[%s1613_s23 + $0x8] sm:$0xff] }
  0x1f   : > { %1394 = vmatmul.msk.f32.gmra.mxu0 %vm558_vm0, %v1604_v27  ;;  %1398 = vmatmul.msk.f32.gmra.mxu2 %vm558_vm0, %v1604_v27  ;;  %v554_v50 = vld [vmem:[%s1613_s23 + $0xf0] sm:$0xff]  ;;  %v552_v51 = vld [vmem:[%s1613_s23 + $0xe0] sm:$0xff]  ;;  %v555_v52 = vld [vmem:[%s1613_s23 + $0xf8] sm:$0xff] }
  0x20   : > { %740 = vmatpush.msrb.mxu3 %v507_v28  ;;  %694 = vmatpush.msrb.mxu1 %v505_v29  ;;  %v553_v53 = vld [vmem:[%s1613_s23 + $0xe8] sm:$0xff]  ;;  %v546_v54 = vld [vmem:[%s1613_s23 + $0xb0] sm:$0xff]  ;;  %v544_v55 = vld [vmem:[%s1613_s23 + $0xa0] sm:$0xff] }
  0x21   : > { %1396 = vmatmul.msk.f32.gmra.mxu1 %vm558_vm0, %v1604_v27  ;;  %718 = vmatpush.msrb.mxu2 %v498_v30  ;;  %v547_v56 = vld [vmem:[%s1613_s23 + $0xb8] sm:$0xff]  ;;  %v545_v57 = vld [vmem:[%s1613_s23 + $0xa8] sm:$0xff]  ;;  %v538_v58 = vld [vmem:[%s1613_s23 + $0x70] sm:$0xff] }
  0x22   : > { %1400 = vmatmul.msk.f32.gmra.mxu3 %vm558_vm0, %v1604_v27  ;;  %672 = vmatpush.msrb.mxu0 %v496_v31  ;;  %v536_v59 = vld [vmem:[%s1613_s23 + $0x60] sm:$0xff]  ;;  %v539_v60 = vld [vmem:[%s1613_s23 + $0x78] sm:$0xff]  ;;  %v537_v61 = vld [vmem:[%s1613_s23 + $0x68] sm:$0xff] }
  0x23   : > { %741 = vmatpush.msrb.mxu3 %v499_v32  ;;  %695 = vmatpush.msrb.mxu1 %v497_v33  ;;  %v530_v62 = vld [vmem:[%s1613_s23 + $0x30] sm:$0xff]  ;;  %v528_v63 = vld [vmem:[%s1613_s23 + $0x20] sm:$0xff]  ;;  %v531_v1 = vld [vmem:[%s1613_s23 + $0x38] sm:$0xff] }
  0x24   : > { %815 = vmatpush.msra.mxu2 %v550_v34  ;;  %769 = vmatpush.msra.mxu0 %v548_v35  ;;  %v749_v0 = vld [vmem:[%s1775_s3] sm:$0xff]  ;;  %v529_v2 = vld [vmem:[%s1613_s23 + $0x28] sm:$0xff] }
  0x25   : > { %838 = vmatpush.msra.mxu3 %v551_v36  ;;  %792 = vmatpush.msra.mxu1 %v549_v37  ;;  %v750_v3 = vld [vmem:[%s1775_s3 + $0x8] sm:$0xff] }
  0x26   : > { %816 = vmatpush.msra.mxu2 %v542_v38  ;;  %770 = vmatpush.msra.mxu0 %v540_v39 }
  0x27   : > { %1401 = vmatmul.msk.f32.vlgmr.msrb.gmra.mxu0 %vm558_vm0, %v1579_v14  ;;  %1405 = vmatmul.msk.f32.vlgmr.msrb.gmra.mxu2 %vm558_vm0, %v1579_v14 }
  0x28   : > { %839 = vmatpush.msra.mxu3 %v543_v40  ;;  %793 = vmatpush.msra.mxu1 %v541_v41 }
  0x29   : > { %1403 = vmatmul.msk.f32.vlgmr.msrb.gmra.mxu1 %vm558_vm0, %v1579_v14  ;;  %817 = vmatpush.msra.mxu2 %v534_v42 }
  0x2a   : > { %1407 = vmatmul.msk.f32.vlgmr.msrb.gmra.mxu3 %vm558_vm0, %v1579_v14  ;;  %771 = vmatpush.msra.mxu0 %v532_v43 }
  0x2b   : > { %840 = vmatpush.msra.mxu3 %v535_v44  ;;  %794 = vmatpush.msra.mxu1 %v533_v45 }
  0x2c   : > { %818 = vmatpush.msra.mxu2 %v526_v46  ;;  %772 = vmatpush.msra.mxu0 %v524_v47 }
  0x2d   : > { %841 = vmatpush.msra.mxu3 %v527_v48  ;;  %795 = vmatpush.msra.mxu1 %v525_v49 }
  0x2e   : > { %907 = vmatpush.msrb.mxu2 %v554_v50  ;;  %861 = vmatpush.msrb.mxu0 %v552_v51 }
  0x2f   : > { %1402 = vmatmul.msk.f32.gmra.mxu0 %vm558_vm0, %v1604_v27  ;;  %1406 = vmatmul.msk.f32.gmra.mxu2 %vm558_vm0, %v1604_v27 }
  0x30   : > { %930 = vmatpush.msrb.mxu3 %v555_v52  ;;  %884 = vmatpush.msrb.mxu1 %v553_v53 }
  0x31   : > { %1404 = vmatmul.msk.f32.gmra.mxu1 %vm558_vm0, %v1604_v27  ;;  %908 = vmatpush.msrb.mxu2 %v546_v54 }
  0x32   : > { %1408 = vmatmul.msk.f32.gmra.mxu3 %vm558_vm0, %v1604_v27  ;;  %862 = vmatpush.msrb.mxu0 %v544_v55 }
  0x33   : > { %931 = vmatpush.msrb.mxu3 %v547_v56  ;;  %885 = vmatpush.msrb.mxu1 %v545_v57 }
  0x34   : > { %909 = vmatpush.msrb.mxu2 %v538_v58  ;;  %863 = vmatpush.msrb.mxu0 %v536_v59 }
  0x35   : > { %932 = vmatpush.msrb.mxu3 %v539_v60  ;;  %886 = vmatpush.msrb.mxu1 %v537_v61 }
  0x36   : > { %910 = vmatpush.msrb.mxu2 %v530_v62  ;;  %864 = vmatpush.msrb.mxu0 %v528_v63 }
  0x37   : > { %1409 = vmatmul.msk.f32.vlgmr.msra.gmra.mxu0 %vm558_vm0, %v749_v0  ;;  %1413 = vmatmul.msk.f32.vlgmr.msra.gmra.mxu2 %vm558_vm0, %v749_v0 }
  0x38   : > { %933 = vmatpush.msrb.mxu3 %v531_v1  ;;  %887 = vmatpush.msrb.mxu1 %v529_v2 }
  0x39   : > { %1411 = vmatmul.msk.f32.vlgmr.msra.gmra.mxu1 %vm558_vm0, %v749_v0 }
  0x3a   : > { %1415 = vmatmul.msk.f32.vlgmr.msra.gmra.mxu3 %vm558_vm0, %v749_v0 }
  0x3f   : > { %1410 = vmatmul.msk.f32.gmra.mxu0 %vm558_vm0, %v750_v3  ;;  %1414 = vmatmul.msk.f32.gmra.mxu2 %vm558_vm0, %v750_v3 }
  0x41   : > { %1412 = vmatmul.msk.f32.gmra.mxu1 %vm558_vm0, %v750_v3 }
  0x42   : > { %1416 = vmatmul.msk.f32.gmra.mxu3 %vm558_vm0, %v750_v3 }
  0x47   : > { %1417 = vmatmul.msk.f32.vlgmr.msrb.gmra.mxu0 %vm558_vm0, %v749_v0  ;;  %1421 = vmatmul.msk.f32.vlgmr.msrb.gmra.mxu2 %vm558_vm0, %v749_v0 }
  0x49   : > { %1419 = vmatmul.msk.f32.vlgmr.msrb.gmra.mxu1 %vm558_vm0, %v749_v0 }
  0x4a   : > { %1423 = vmatmul.msk.f32.vlgmr.msrb.gmra.mxu3 %vm558_vm0, %v749_v0 }
  0x4f   : > { %1418 = vmatmul.msk.f32.gmra.mxu0 %vm558_vm0, %v750_v3  ;;  %1422 = vmatmul.msk.f32.gmra.mxu2 %vm558_vm0, %v750_v3 }
  0x51   : > { %1420 = vmatmul.msk.f32.gmra.mxu1 %vm558_vm0, %v750_v3 }
  0x52   : > { %1424 = vmatmul.msk.f32.gmra.mxu3 %vm558_vm0, %v750_v3 }
  0x94   : > { %v582_v4 = vpop.f32.mrf.mxu0 }
  0x95   : > { %941 = vst [vmem:[%s1703_s14] sm:$0xff] %v582_v4  ;;  %v973_v7 = vmul.f32 %v582_v4, %v582_v4 }
  0x96   : > { %v605_v5 = vpop.f32.mrf.mxu1 }
  0x97   : > { %942 = vst [vmem:[%s1703_s14 + $0x8] sm:$0xff] %v605_v5  ;;  %v977_v8 = vmul.f32 %v605_v5, %v605_v5  ;;  %v975_v10 = vadd.f32 %v605_v5, %v582_v4 }
  0x99   : > { %v979_v14 = vadd.f32 %v977_v8, %v973_v7 }
  0x9a   : > { %v628_v6 = vpop.f32.mrf.mxu2 }
  0x9b   : > { %943 = vst [vmem:[%s1703_s14 + $0x10] sm:$0xff] %v628_v6  ;;  %v983_v11 = vmul.f32 %v628_v6, %v628_v6  ;;  %v981_v15 = vadd.f32 %v975_v10, %v628_v6 }
  0x9c   : > { %v585_v9 = vpop.f32.mrf.mxu0 }
  0x9d   : > { %949 = vst [vmem:[%s1703_s14 + $0x40] sm:$0xff] %v585_v9  ;;  %v651_v12 = vpop.f32.mrf.mxu3  ;;  %v985_v16 = vadd.f32 %v983_v11, %v979_v14  ;;  %v974_v19 = vmul.f32 %v585_v9, %v585_v9 }
  0x9e   : > { %944 = vst [vmem:[%s1703_s14 + $0x18] sm:$0xff] %v651_v12  ;;  %v608_v13 = vpop.f32.mrf.mxu1  ;;  %v989_v17 = vmul.f32 %v651_v12, %v651_v12  ;;  %v987_v20 = vadd.f32 %v981_v15, %v651_v12 }
  0x9f   : > { %950 = vst [vmem:[%s1703_s14 + $0x48] sm:$0xff] %v608_v13  ;;  %v978_v21 = vmul.f32 %v608_v13, %v608_v13  ;;  %v976_v22 = vadd.f32 %v608_v13, %v585_v9 }
  0xa0   : > { %v991_v24 = vadd.f32 %v989_v17, %v985_v16 }
  0xa1   : > { %v980_v30 = vadd.f32 %v978_v21, %v974_v19 }
  0xa2   : > { %v631_v18 = vpop.f32.mrf.mxu2 }
  0xa3   : > { %951 = vst [vmem:[%s1703_s14 + $0x50] sm:$0xff] %v631_v18  ;;  %v984_v25 = vmul.f32 %v631_v18, %v631_v18  ;;  %v982_v31 = vadd.f32 %v976_v22, %v631_v18 }
  0xa4   : > { %v674_v23 = vpop.f32.mrf.mxu0 }
  0xa5   : > { %v654_v26 = vpop.f32.mrf.mxu3  ;;  %945 = vst [vmem:[%s1703_s14 + $0x20] sm:$0xff] %v674_v23  ;;  %v993_v27 = vadd.f32 %v987_v20, %v674_v23  ;;  %v995_v28 = vmul.f32 %v674_v23, %v674_v23  ;;  %v986_v34 = vadd.f32 %v984_v25, %v980_v30 }
  0xa6   : > { %952 = vst [vmem:[%s1703_s14 + $0x58] sm:$0xff] %v654_v26  ;;  %v697_v29 = vpop.f32.mrf.mxu1  ;;  %v990_v35 = vmul.f32 %v654_v26, %v654_v26  ;;  %v988_v38 = vadd.f32 %v982_v31, %v654_v26 }
  0xa7   : > { %v997_v32 = vadd.f32 %v995_v28, %v991_v24  ;;  %946 = vst [vmem:[%s1703_s14 + $0x28] sm:$0xff] %v697_v29  ;;  %v1001_v33 = vmul.f32 %v697_v29, %v697_v29  ;;  %v999_v36 = vadd.f32 %v993_v27, %v697_v29 }
  0xa8   : > { %v992_v43 = vadd.f32 %v990_v35, %v986_v34 }
  0xa9   : > { %v1003_v39 = vadd.f32 %v1001_v33, %v997_v32 }
  0xaa   : > { %v720_v37 = vpop.f32.mrf.mxu2 }
  0xab   : > { %947 = vst [vmem:[%s1703_s14 + $0x30] sm:$0xff] %v720_v37  ;;  %v1005_v40 = vadd.f32 %v999_v36, %v720_v37  ;;  %v1007_v41 = vmul.f32 %v720_v37, %v720_v37 }
  0xac   : > { %v677_v42 = vpop.f32.mrf.mxu0 }
  0xad   : > { %v1009_v44 = vadd.f32 %v1007_v41, %v1003_v39  ;;  %953 = vst [vmem:[%s1703_s14 + $0x60] sm:$0xff] %v677_v42  ;;  %v994_v45 = vadd.f32 %v988_v38, %v677_v42  ;;  %v996_v46 = vmul.f32 %v677_v42, %v677_v42  ;;  %v743_v47 = vpop.f32.mrf.mxu3 }
  0xae   : > { %948 = vst [vmem:[%s1703_s14 + $0x38] sm:$0xff] %v743_v47  ;;  %v1011_v48 = vadd.f32 %v1005_v40, %v743_v47  ;;  %v1013_v49 = vmul.f32 %v743_v47, %v743_v47  ;;  %v700_v50 = vpop.f32.mrf.mxu1 }
  0xaf   : > { %v998_v51 = vadd.f32 %v996_v46, %v992_v43  ;;  %954 = vst [vmem:[%s1703_s14 + $0x68] sm:$0xff] %v700_v50  ;;  %v1002_v52 = vmul.f32 %v700_v50, %v700_v50  ;;  %v1000_v54 = vadd.f32 %v994_v45, %v700_v50 }
  0xb0   : > { %v1015_v53 = vadd.f32 %v1013_v49, %v1009_v44  ;;  %1021 = vst [vmem:[%s464_s18] sm:$0xff] %v1011_v48 }
  0xb1   : > { %v1004_v56 = vadd.f32 %v1002_v52, %v998_v51 }
  0xb2   : > { %v723_v55 = vpop.f32.mrf.mxu2  ;;  %1027 = vst [vmem:[%s469_s21] sm:$0xff] %v1015_v53 }
  0xb3   : > { %955 = vst [vmem:[%s1703_s14 + $0x70] sm:$0xff] %v723_v55  ;;  %v1006_v57 = vadd.f32 %v1000_v54, %v723_v55  ;;  %v1008_v58 = vmul.f32 %v723_v55, %v723_v55 }
  0xb4   : > { %v774_v59 = vpop.f32.mrf.mxu0 }
  0xb5   : > { %v1010_v60 = vadd.f32 %v1008_v58, %v1004_v56  ;;  %v746_v61 = vpop.f32.mrf.mxu3  ;;  %957 = vst [vmem:[%s1735_s24] sm:$0xff] %v774_v59  ;;  %v1029_v3 = vmul.f32 %v774_v59, %v774_v59 }
  0xb6   : > { %956 = vst [vmem:[%s1703_s14 + $0x78] sm:$0xff] %v746_v61  ;;  %v1012_v62 = vadd.f32 %v1006_v57, %v746_v61  ;;  %v1014_v63 = vmul.f32 %v746_v61, %v746_v61  ;;  %v797_v0 = vpop.f32.mrf.mxu1 }
  0xb7   : > { %958 = vst [vmem:[%s1735_s24 + $0x8] sm:$0xff] %v797_v0  ;;  %v1033_v4 = vmul.f32 %v797_v0, %v797_v0  ;;  %v1031_v6 = vadd.f32 %v797_v0, %v774_v59 }
  0xb8   : > { %v1016_v1 = vadd.f32 %v1014_v63, %v1010_v60  ;;  %1022 = vst [vmem:[%s464_s18 + $0x8] sm:$0xff] %v1012_v62 }
  0xb9   : > { %v1035_v10 = vadd.f32 %v1033_v4, %v1029_v3 }
  0xba   : > { %v820_v2 = vpop.f32.mrf.mxu2  ;;  %1028 = vst [vmem:[%s469_s21 + $0x8] sm:$0xff] %v1016_v1 }
  0xbb   : > { %959 = vst [vmem:[%s1735_s24 + $0x10] sm:$0xff] %v820_v2  ;;  %v1039_v7 = vmul.f32 %v820_v2, %v820_v2  ;;  %v1037_v11 = vadd.f32 %v1031_v6, %v820_v2 }
  0xbc   : > { %v777_v5 = vpop.f32.mrf.mxu0 }
  0xbd   : > { %965 = vst [vmem:[%s1735_s24 + $0x40] sm:$0xff] %v777_v5  ;;  %v843_v8 = vpop.f32.mrf.mxu3  ;;  %v1041_v12 = vadd.f32 %v1039_v7, %v1035_v10  ;;  %v1030_v15 = vmul.f32 %v777_v5, %v777_v5 }
  0xbe   : > { %960 = vst [vmem:[%s1735_s24 + $0x18] sm:$0xff] %v843_v8  ;;  %v800_v9 = vpop.f32.mrf.mxu1  ;;  %v1045_v13 = vmul.f32 %v843_v8, %v843_v8  ;;  %v1043_v16 = vadd.f32 %v1037_v11, %v843_v8 }
  0xbf   : > { %966 = vst [vmem:[%s1735_s24 + $0x48] sm:$0xff] %v800_v9  ;;  %v1034_v17 = vmul.f32 %v800_v9, %v800_v9  ;;  %v1032_v18 = vadd.f32 %v800_v9, %v777_v5 }
  0xc0   : > { %v1047_v20 = vadd.f32 %v1045_v13, %v1041_v12 }
  0xc1   : > { %v1036_v26 = vadd.f32 %v1034_v17, %v1030_v15 }
  0xc2   : > { %v823_v14 = vpop.f32.mrf.mxu2 }
  0xc3   : > { %967 = vst [vmem:[%s1735_s24 + $0x50] sm:$0xff] %v823_v14  ;;  %v1040_v21 = vmul.f32 %v823_v14, %v823_v14  ;;  %v1038_v27 = vadd.f32 %v1032_v18, %v823_v14 }
  0xc4   : > { %v866_v19 = vpop.f32.mrf.mxu0 }
  0xc5   : > { %v846_v22 = vpop.f32.mrf.mxu3  ;;  %961 = vst [vmem:[%s1735_s24 + $0x20] sm:$0xff] %v866_v19  ;;  %v1049_v23 = vadd.f32 %v1043_v16, %v866_v19  ;;  %v1051_v24 = vmul.f32 %v866_v19, %v866_v19  ;;  %v1042_v30 = vadd.f32 %v1040_v21, %v1036_v26 }
  0xc6   : > { %968 = vst [vmem:[%s1735_s24 + $0x58] sm:$0xff] %v846_v22  ;;  %v889_v25 = vpop.f32.mrf.mxu1  ;;  %v1046_v31 = vmul.f32 %v846_v22, %v846_v22  ;;  %v1044_v34 = vadd.f32 %v1038_v27, %v846_v22 }
  0xc7   : > { %v1053_v28 = vadd.f32 %v1051_v24, %v1047_v20  ;;  %962 = vst [vmem:[%s1735_s24 + $0x28] sm:$0xff] %v889_v25  ;;  %v1057_v29 = vmul.f32 %v889_v25, %v889_v25  ;;  %v1055_v32 = vadd.f32 %v1049_v23, %v889_v25 }
  0xc8   : > { %v1048_v39 = vadd.f32 %v1046_v31, %v1042_v30 }
  0xc9   : > { %v1059_v35 = vadd.f32 %v1057_v29, %v1053_v28 }
  0xca   : > { %v912_v33 = vpop.f32.mrf.mxu2 }
  0xcb   : > { %963 = vst [vmem:[%s1735_s24 + $0x30] sm:$0xff] %v912_v33  ;;  %v1061_v36 = vadd.f32 %v1055_v32, %v912_v33  ;;  %v1063_v37 = vmul.f32 %v912_v33, %v912_v33 }
  0xcc   : > { %v869_v38 = vpop.f32.mrf.mxu0 }
  0xcd   : > { %v1065_v40 = vadd.f32 %v1063_v37, %v1059_v35  ;;  %969 = vst [vmem:[%s1735_s24 + $0x60] sm:$0xff] %v869_v38  ;;  %v1050_v41 = vadd.f32 %v1044_v34, %v869_v38  ;;  %v1052_v42 = vmul.f32 %v869_v38, %v869_v38  ;;  %v935_v43 = vpop.f32.mrf.mxu3 }
  0xce   : > { %964 = vst [vmem:[%s1735_s24 + $0x38] sm:$0xff] %v935_v43  ;;  %v1067_v44 = vadd.f32 %v1061_v36, %v935_v43  ;;  %v1069_v45 = vmul.f32 %v935_v43, %v935_v43  ;;  %v892_v46 = vpop.f32.mrf.mxu1 }
  0xcf   : > { %v1054_v47 = vadd.f32 %v1052_v42, %v1048_v39  ;;  %970 = vst [vmem:[%s1735_s24 + $0x68] sm:$0xff] %v892_v46  ;;  %v1058_v48 = vmul.f32 %v892_v46, %v892_v46  ;;  %v1056_v50 = vadd.f32 %v1050_v41, %v892_v46 }
  0xd0   : > { %v1071_v49 = vadd.f32 %v1069_v45, %v1065_v40  ;;  %1077 = vst [vmem:[%s474_s26] sm:$0xff] %v1067_v44 }
  0xd1   : > { %v1060_v52 = vadd.f32 %v1058_v48, %v1054_v47 }
  0xd2   : > { %v915_v51 = vpop.f32.mrf.mxu2  ;;  %1083 = vst [vmem:[%s479_s29] sm:$0xff] %v1071_v49 }
  0xd3   : > { %971 = vst [vmem:[%s1735_s24 + $0x70] sm:$0xff] %v915_v51  ;;  %v1062_v53 = vadd.f32 %v1056_v50, %v915_v51  ;;  %v1064_v54 = vmul.f32 %v915_v51, %v915_v51 }
  0xd5   : > { %v1066_v55 = vadd.f32 %v1064_v54, %v1060_v52  ;;  %v938_v56 = vpop.f32.mrf.mxu3 }
  0xd6   : > { %972 = vst [vmem:[%s1735_s24 + $0x78] sm:$0xff] %v938_v56  ;;  %v1068_v57 = vadd.f32 %v1062_v53, %v938_v56  ;;  %v1070_v58 = vmul.f32 %v938_v56, %v938_v56 }
  0xd8   : > { %v1072_v59 = vadd.f32 %v1070_v58, %v1066_v55  ;;  %1078 = vst [vmem:[%s474_s26 + $0x8] sm:$0xff] %v1068_v57 }
  0xda   : > { %1084 = vst [vmem:[%s479_s29 + $0x8] sm:$0xff] %v1072_v59 }
  0xdb PF: > { %s20_s11 = sadd.s32 1, %s1482_s11   ;;  %s1782_s30 = smov %s1478_s10 }
  0xdc   : > { %p17_p5 = scmp.ge.s32.totalorder %s20_s11, 4   ;;  %s1783_s10 = smov %s1785_s12 }
  0xde   :  { %19 = sbr.rel (!%p17_p5) target bundleno = 2 (0x2), region = 133 }

// kernel: _attention_block_forward.4
= control target key start
LH: loop header
LB: loop body
LE: loop exit
PB: predicated region body
PF: predicated region fallthrough
CT: control target
= control target key end

     0   :  { %s1065_s27 = smov 0   ;;  %s1067_s28 = smov 0   ;;  %s1220_s0 = inlined_call_operand.vmem [shape: f32[2,16,1024], index: 0, kind: input, shape index: {}]   ;;  %s1221_s1 = inlined_call_operand.vmem [shape: f32[2,16,1024], index: 1, kind: input, shape index: {}]   ;;  %s1222_s2 = inlined_call_operand.vmem [shape: f32[16,1], index: 2, kind: input, shape index: {}]   ;;  %s1223_s3 = inlined_call_operand.vmem [shape: f32[16,1], index: 3, kind: input, shape index: {}]   ;;  %s1224_s4 = inlined_call_operand.vmem [shape: f32[16,1], index: 4, kind: input, shape index: {}]   ;;  %s1225_s5 = inlined_call_operand.vmem [shape: f32[1,16], index: 5, kind: input, shape index: {}]   ;;  %s1226_s6 = inlined_call_operand.vmem [shape: f32[2,1,1024], index: 6, kind: output, shape index: {0}]   ;;  %s1227_s7 = inlined_call_operand.vmem [shape: f32[2,1,128], index: 7, kind: output, shape index: {1}]   ;;  %s1228_s8 = inlined_call_operand.vmem [shape: f32[2,1,128], index: 8, kind: output, shape index: {2}]  }
   0x1   :  { %s1069_s29 = smov 0  }
   0x2 LB: > { %s31_s30 = sadd.s32 1, %s1013_s28  ;;  %p949_p0 = scmp.ge.s32.totalorder %s1017_s29, 1  ;;  %s1017_s29 = sphi %s1069_s29, %s19_s29   ;;  %s1013_s28 = sphi %s1067_s28, %s1230_s28   ;;  %s1009_s27 = sphi %s1065_s27, %s1229_s27  }
   0x3   : > { %p33_p1 = scmp.ge.s32.totalorder %s31_s30, 2  ;;  %p309_p2 = scmp.lt.s32.totalorder %s1017_s29, 3 }
   0x5   : > { %s1232_s30 = smov (%p33_p1, %s31_s30), 0  ;;  %p310_p3 = pnand %p949_p0, %p309_p2 }
   0x6   : > { %p368_p4 = scmp.lt.s32.totalorder (!%p310_p3), %s1009_s27, 1 }
   0x7   : > { %313 = sbr.rel (%p310_p3) target bundleno = 303 (0x12f), region = 44 }
   0xc   : > { %v439_v0 = vld [vmem:[%s1222_s2 + $0x8] sm:$0xff]  ;;  %v438_v1 = vld [vmem:[%s1222_s2] sm:$0xff]  ;;  %v1019_v2 = vmov 0   ;;  %s1234_s27 = smov (!%p368_p4, %s1009_s27), 1  ;;  %vm571_vm0 = vcmask 130048   ;;  %vm750_vm1 = vcmask 1040384  }
   0xd   : > { %993 = vset.pattern.permute.xlu1 %v1019_v2  ;;  %992 = vset.pattern.permute.xlu0 %v1019_v2  ;;  %v511_v3 = vld [vmem:[%s1224_s4 + $0x8] sm:$0xff]  ;;  %v466_v5 = vld [vmem:[%s1223_s3] sm:$0xff]  ;;  %s965_s21 = sshll.u32 %s1234_s27, 7  ;;  %vm752_vm2 = vcmask 1042434   ;;  %vm754_vm3 = vcmask 1041408   ;;  %vm756_vm4 = vcmask 1044484   ;;  %s399_s15 = scalar_lea.vmem %s1227_s7, %s1234_s27 }
   0xe   : > { %447 = vperm.xlu0 %992, %v439_v0   ;;  %442 = vperm.xlu1 %993, %v438_v1   ;;  %v467_v4 = vld [vmem:[%s1223_s3 + $0x8] sm:$0xff]  ;;  %v510_v6 = vld [vmem:[%s1224_s4] sm:$0xff]  ;;  %s375_s24 = scalar_lea.vmem %s1220_s0, %s965_s21  ;;  %s1110_s9 = scalar_lea.vmem %s1221_s1, %s965_s21  ;;  %vm758_vm5 = vcmask 1046534   ;;  %vm760_vm6 = vcmask 1045508   ;;  %vm762_vm7 = vcmask 1043456  }
   0xf   : > { %994 = vset.pattern.permute.xlu2 %v1019_v2  ;;  %v414_v9 = vld [vmem:[%s375_s24 + $0x40] sm:$0xff]  ;;  %v415_v10 = vld [vmem:[%s375_s24 + $0x48] sm:$0xff]  ;;  %v416_v11 = vld [vmem:[%s375_s24 + $0x50] sm:$0xff]  ;;  %s954_s12 = sshll.u32 %s1234_s27, 3  ;;  %s404_s18 = scalar_lea.vmem %s1228_s8, %s1234_s27 }
  0x10   : > { %519 = vperm.xlu2 %994, %v511_v3   ;;  %v417_v12 = vld [vmem:[%s375_s24 + $0x58] sm:$0xff]  ;;  %v406_v13 = vld [vmem:[%s375_s24] sm:$0xff]  ;;  %v407_v14 = vld [vmem:[%s375_s24 + $0x8] sm:$0xff]  ;;  %s394_s21 = scalar_lea.vmem %s1226_s6, %s954_s12 }
  0x11   : > { %v408_v15 = vld [vmem:[%s375_s24 + $0x10] sm:$0xff]  ;;  %v409_v17 = vld [vmem:[%s375_s24 + $0x18] sm:$0xff]  ;;  %v418_v18 = vld [vmem:[%s375_s24 + $0x60] sm:$0xff] }
  0x12   : > { %v419_v19 = vld [vmem:[%s375_s24 + $0x68] sm:$0xff]  ;;  %v430_v20 = vld [vmem:[%s1110_s9 + $0x40] sm:$0xff]  ;;  %v420_v22 = vld [vmem:[%s375_s24 + $0x70] sm:$0xff] }
  0x13   : > { %v431_v21 = vld [vmem:[%s1110_s9 + $0x48] sm:$0xff]  ;;  %v421_v23 = vld [vmem:[%s375_s24 + $0x78] sm:$0xff]  ;;  %v410_v24 = vld [vmem:[%s375_s24 + $0x20] sm:$0xff] }
  0x14   : > { %v411_v29 = vld [vmem:[%s375_s24 + $0x28] sm:$0xff]  ;;  %v412_v30 = vld [vmem:[%s375_s24 + $0x30] sm:$0xff]  ;;  %v413_v31 = vld [vmem:[%s375_s24 + $0x38] sm:$0xff] }
  0x15   : > { %v432_v32 = vld [vmem:[%s1110_s9 + $0x50] sm:$0xff]  ;;  %v433_v33 = vld [vmem:[%s1110_s9 + $0x58] sm:$0xff]  ;;  %v422_v34 = vld [vmem:[%s1110_s9] sm:$0xff] }
  0x16   : > { %475 = vperm.xlu0 %992, %v467_v4   ;;  %470 = vperm.xlu1 %993, %v466_v5   ;;  %v423_v39 = vld [vmem:[%s1110_s9 + $0x8] sm:$0xff]  ;;  %v424_v40 = vld [vmem:[%s1110_s9 + $0x10] sm:$0xff]  ;;  %v425_v41 = vld [vmem:[%s1110_s9 + $0x18] sm:$0xff] }
  0x17   : > { %v434_v4 = vld [vmem:[%s1110_s9 + $0x60] sm:$0xff] }
  0x18   : > { %514 = vperm.xlu2 %994, %v510_v6  }
  0x6a   : > { %v1112_v16 = vpop.permute.xlu2 %519 }
  0x72   : > { %v1147_v5 = vpop.permute.xlu2 %514 }
  0x80   : > { %v448_v7 = vpop.permute.xlu0 %447  ;;  %v443_v8 = vpop.permute.xlu1 %442 }
  0x81   : > { %v458_v25 = vmul.f32 %v448_v7, %v414_v9  ;;  %v459_v26 = vmul.f32 %v448_v7, %v415_v10  ;;  %v460_v27 = vmul.f32 %v448_v7, %v416_v11  ;;  %v461_v28 = vmul.f32 %v448_v7, %v417_v12  ;;  %v435_v10 = vld [vmem:[%s1110_s9 + $0x68] sm:$0xff] }
  0x82   : > { %v450_v35 = vmul.f32 %v443_v8, %v406_v13  ;;  %v451_v36 = vmul.f32 %v443_v8, %v407_v14  ;;  %v452_v37 = vmul.f32 %v443_v8, %v408_v15  ;;  %v453_v38 = vmul.f32 %v443_v8, %v409_v17 }
  0x83   : > { %v462_v42 = vmul.f32 %v448_v7, %v418_v18  ;;  %v463_v43 = vmul.f32 %v448_v7, %v419_v19  ;;  %v1122_v44 = vmul.f32 %v448_v7, %v420_v22  ;;  %v1124_v45 = vmul.f32 %v448_v7, %v421_v23 }
  0x84   : > { %v1130_v48 = vmul.f32 %v443_v8, %v410_v24  ;;  %v1132_v49 = vmul.f32 %v443_v8, %v411_v29  ;;  %v1134_v50 = vmul.f32 %v443_v8, %v412_v30  ;;  %v1136_v51 = vmul.f32 %v443_v8, %v413_v31  ;;  %v437_v29 = vld [vmem:[%s1110_s9 + $0x78] sm:$0xff] }
  0x88   : > { %v1126_v46 = vpop.permute.xlu0 %475  ;;  %v1128_v47 = vpop.permute.xlu1 %470 }
  0x89   : > { %v486_v52 = vmul.f32 %v1126_v46, %v430_v20  ;;  %v487_v53 = vmul.f32 %v1126_v46, %v431_v21  ;;  %v488_v54 = vmul.f32 %v1126_v46, %v432_v32  ;;  %v489_v55 = vmul.f32 %v1126_v46, %v433_v33 }
  0x8a   : > { %v478_v56 = vmul.f32 %v1128_v47, %v422_v34  ;;  %v479_v57 = vmul.f32 %v1128_v47, %v423_v39  ;;  %v480_v58 = vmul.f32 %v1128_v47, %v424_v40  ;;  %v481_v59 = vmul.f32 %v1128_v47, %v425_v41  ;;  %v426_v34 = vld [vmem:[%s1110_s9 + $0x20] sm:$0xff] }
  0x8b   : > { %v502_v60 = vadd.f32 %v486_v52, %v458_v25  ;;  %v503_v61 = vadd.f32 %v487_v53, %v459_v26  ;;  %v504_v62 = vadd.f32 %v488_v54, %v460_v27  ;;  %v505_v63 = vadd.f32 %v489_v55, %v461_v28  ;;  %v436_v28 = vld [vmem:[%s1110_s9 + $0x70] sm:$0xff]  ;;  %v570_v40 = vld [vmem:[%s1225_s5] sm:$0x1] }
  0x8c   : > { %v494_v0 = vadd.f32 %v478_v56, %v450_v35  ;;  %v495_v1 = vadd.f32 %v479_v57, %v451_v36  ;;  %v496_v2 = vadd.f32 %v480_v58, %v452_v37  ;;  %v497_v3 = vadd.f32 %v481_v59, %v453_v38  ;;  %v427_v38 = vld [vmem:[%s1110_s9 + $0x28] sm:$0xff]  ;;  %v428_v53 = vld [vmem:[%s1110_s9 + $0x30] sm:$0xff] }
  0x8d   : > { %v530_v6 = vadd.f32 %v1112_v16, %v502_v60  ;;  %v531_v7 = vadd.f32 %v1112_v16, %v503_v61  ;;  %v532_v8 = vadd.f32 %v1112_v16, %v504_v62  ;;  %v533_v9 = vadd.f32 %v1112_v16, %v505_v63  ;;  %v429_v61 = vld [vmem:[%s1110_s9 + $0x38] sm:$0xff] }
  0x8e   : > { %v522_v11 = vadd.f32 %v1147_v5, %v494_v0  ;;  %v523_v12 = vadd.f32 %v1147_v5, %v495_v1  ;;  %v524_v13 = vadd.f32 %v1147_v5, %v496_v2  ;;  %v525_v14 = vadd.f32 %v1147_v5, %v497_v3 }
  0x8f   : > { %v546_v15 = vmul.f32 0.2, %v530_v6  ;;  %v547_v17 = vmul.f32 0.2, %v531_v7  ;;  %v548_v18 = vmul.f32 0.2, %v532_v8  ;;  %v490_v19 = vmul.f32 %v1126_v46, %v434_v4 }
  0x90   : > { %v549_v20 = vmul.f32 0.2, %v533_v9  ;;  %v538_v21 = vmul.f32 0.2, %v522_v11  ;;  %v539_v22 = vmul.f32 0.2, %v523_v12  ;;  %v491_v23 = vmul.f32 %v1126_v46, %v435_v10 }
  0x91   : > { %v562_v24 = vmax.f32 %v530_v6, %v546_v15  ;;  %v563_v25 = vmax.f32 %v531_v7, %v547_v17  ;;  %v564_v26 = vmax.f32 %v532_v8, %v548_v18  ;;  %v540_v27 = vmul.f32 0.2, %v524_v13 }
  0x92   : > { %v565_v30 = vmax.f32 %v533_v9, %v549_v20  ;;  %v554_v31 = vmax.f32 %v522_v11, %v538_v21  ;;  %v555_v32 = vmax.f32 %v523_v12, %v539_v22  ;;  %v541_v33 = vmul.f32 0.2, %v525_v14 }
  0x93   : > { %589 = vmatpush.msra.mxu0 %v562_v24  ;;  %609 = vmatpush.msra.mxu1 %v563_v25  ;;  %v556_v35 = vmax.f32 %v524_v13, %v540_v27  ;;  %v506_v36 = vadd.f32 %v490_v19, %v462_v42  ;;  %v507_v37 = vadd.f32 %v491_v23, %v463_v43 }
  0x94   : > { %629 = vmatpush.msra.mxu2 %v564_v26  ;;  %649 = vmatpush.msra.mxu3 %v565_v30  ;;  %v557_v39 = vmax.f32 %v525_v14, %v541_v33  ;;  %v492_v41 = vmul.f32 %v1126_v46, %v436_v28  ;;  %v493_v52 = vmul.f32 %v1126_v46, %v437_v29 }
  0x95   : > { %590 = vmatpush.msra.mxu0 %v554_v31  ;;  %610 = vmatpush.msra.mxu1 %v555_v32  ;;  %v534_v42 = vadd.f32 %v1112_v16, %v506_v36  ;;  %v535_v43 = vadd.f32 %v1112_v16, %v507_v37  ;;  %v482_v54 = vmul.f32 %v1128_v47, %v426_v34 }
  0x96   : > { %630 = vmatpush.msra.mxu2 %v556_v35  ;;  %650 = vmatpush.msra.mxu3 %v557_v39  ;;  %v508_v55 = vadd.f32 %v492_v41, %v1122_v44  ;;  %v509_v56 = vadd.f32 %v493_v52, %v1124_v45  ;;  %v483_v57 = vmul.f32 %v1128_v47, %v427_v38 }
  0x97   : > { %956 = vmatmul.msk.f32.vlgmr.msra.gmra.mxu1 %vm571_vm0, %v570_v40  ;;  %957 = vmatmul.msk.f32.vlgmr.msra.gmra.mxu2 %vm571_vm0, %v570_v40  ;;  %v550_v46 = vmul.f32 0.2, %v534_v42  ;;  %v551_v58 = vmul.f32 0.2, %v535_v43  ;;  %v498_v59 = vadd.f32 %v482_v54, %v1130_v48  ;;  %v484_v60 = vmul.f32 %v1128_v47, %v428_v53 }
  0x98   : > { %958 = vmatmul.msk.f32.vlgmr.msra.gmra.mxu3 %vm571_vm0, %v570_v40  ;;  %v536_v62 = vadd.f32 %v1112_v16, %v508_v55  ;;  %v537_v44 = vadd.f32 %v1112_v16, %v509_v56  ;;  %955 = vmatmul.msk.f32.vlgmr.msra.gmra.mxu0 %vm571_vm0, %v570_v40  ;;  %v499_v45 = vadd.f32 %v483_v57, %v1132_v49 }
  0x99   : > { %v566_v63 = vmax.f32 %v534_v42, %v550_v46  ;;  %v567_v0 = vmax.f32 %v535_v43, %v551_v58  ;;  %v526_v1 = vadd.f32 %v1147_v5, %v498_v59  ;;  %v500_v2 = vadd.f32 %v484_v60, %v1134_v50 }
  0x9a   : > { %v552_v48 = vmul.f32 0.2, %v536_v62  ;;  %v553_v3 = vmul.f32 0.2, %v537_v44  ;;  %v527_v4 = vadd.f32 %v1147_v5, %v499_v45  ;;  %v485_v6 = vmul.f32 %v1128_v47, %v429_v61 }
  0x9b   : > { %669 = vmatpush.msrb.mxu0 %v566_v63  ;;  %689 = vmatpush.msrb.mxu1 %v567_v0  ;;  %v542_v7 = vmul.f32 0.2, %v526_v1  ;;  %v528_v16 = vadd.f32 %v1147_v5, %v500_v2 }
  0x9c   : > { %v568_v8 = vmax.f32 %v536_v62, %v552_v48  ;;  %v569_v9 = vmax.f32 %v537_v44, %v553_v3  ;;  %v543_v49 = vmul.f32 0.2, %v527_v4  ;;  %v501_v10 = vadd.f32 %v485_v6, %v1136_v51 }
  0x9d   : > { %v558_v11 = vmax.f32 %v526_v1, %v542_v7  ;;  %v544_v12 = vmul.f32 0.2, %v528_v16 }
  0x9e   : > { %709 = vmatpush.msrb.mxu2 %v568_v8  ;;  %729 = vmatpush.msrb.mxu3 %v569_v9  ;;  %v559_v50 = vmax.f32 %v527_v4, %v543_v49  ;;  %v529_v13 = vadd.f32 %v1147_v5, %v501_v10 }
  0x9f   : > { %670 = vmatpush.msrb.mxu0 %v558_v11  ;;  %v560_v14 = vmax.f32 %v528_v16, %v544_v12 }
  0xa0   : > { %690 = vmatpush.msrb.mxu1 %v559_v50  ;;  %v545_v47 = vmul.f32 0.2, %v529_v13  ;;  %959 = vmatmul.msk.f32.vlgmr.msrb.gmra.mxu0 %vm571_vm0, %v570_v40 }
  0xa1   : > { %710 = vmatpush.msrb.mxu2 %v560_v14  ;;  %960 = vmatmul.msk.f32.vlgmr.msrb.gmra.mxu1 %vm571_vm0, %v570_v40 }
  0xa2   : > { %v561_v15 = vmax.f32 %v529_v13, %v545_v47  ;;  %961 = vmatmul.msk.f32.vlgmr.msrb.gmra.mxu2 %vm571_vm0, %v570_v40 }
  0xa4   : > { %730 = vmatpush.msrb.mxu3 %v561_v15 }
  0xa5   : > { %962 = vmatmul.msk.f32.vlgmr.msrb.gmra.mxu3 %vm571_vm0, %v570_v40 }
 0x114   : > { %v612_v17 = vpop.f32.mrf.mxu1 }
 0x115   : > { %v592_v51 = vpop.f32.mrf.mxu0  ;;  %v775_v18 = vmul.f32 %v612_v17, %v612_v17  ;;  %v743_v52 = vrot.slane %v612_v17, 7 }
 0x116   : > { %v774_v19 = vmul.f32 %v592_v51, %v592_v51  ;;  %v766_v5 = vadd.f32 %v612_v17, %v592_v51 }
 0x117   : > { %v751_v59 = vsel %vm750_vm1, %v592_v51, %v743_v52 }
 0x118   : > { %v782_v21 = vadd.f32 %v775_v18, %v774_v19 }
 0x11a   : > { %v632_v20 = vpop.f32.mrf.mxu2 }
 0x11b   : > { %v767_v22 = vadd.f32 %v766_v5, %v632_v20  ;;  %v776_v23 = vmul.f32 %v632_v20, %v632_v20  ;;  %v652_v24 = vpop.f32.mrf.mxu3  ;;  %v744_v37 = vrot.slane %v632_v20, 6 }
 0x11c   : > { %v777_v25 = vmul.f32 %v652_v24, %v652_v24  ;;  %v745_v38 = vrot.slane %v652_v24, 5 }
 0x11d   : > { %v783_v26 = vadd.f32 %v782_v21, %v776_v23  ;;  %v768_v27 = vadd.f32 %v767_v22, %v652_v24  ;;  %v672_v28 = vpop.f32.mrf.mxu0 }
 0x11e   : > { %v778_v29 = vmul.f32 %v672_v28, %v672_v28  ;;  %v692_v32 = vpop.f32.mrf.mxu1  ;;  %v746_v53 = vrot.slane %v672_v28, 4  ;;  %v753_v56 = vsel %vm752_vm2, %v744_v37, %v745_v38 }
 0x11f   : > { %v784_v30 = vadd.f32 %v783_v26, %v777_v25  ;;  %v769_v31 = vadd.f32 %v768_v27, %v672_v28  ;;  %v779_v33 = vmul.f32 %v692_v32, %v692_v32  ;;  %v747_v42 = vrot.slane %v692_v32, 3 }
 0x120   : > { %v755_v44 = vsel %vm754_vm3, %v751_v59, %v753_v56 }
 0x121   : > { %v785_v34 = vadd.f32 %v784_v30, %v778_v29  ;;  %v770_v35 = vadd.f32 %v769_v31, %v692_v32  ;;  %v757_v60 = vsel %vm756_vm4, %v746_v53, %v747_v42 }
 0x123   : > { %v786_v36 = vadd.f32 %v785_v34, %v779_v33 }
 0x125   : > { %v712_v39 = vpop.f32.mrf.mxu2 }
 0x126   : > { %v771_v40 = vadd.f32 %v770_v35, %v712_v39  ;;  %v780_v41 = vmul.f32 %v712_v39, %v712_v39  ;;  %v748_v43 = vrot.slane %v712_v39, 2 }
 0x128   : > { %v787_v54 = vadd.f32 %v786_v36, %v780_v41  ;;  %v732_v55 = vpop.f32.mrf.mxu3 }
 0x129   : > { %v749_v57 = vrot.slane %v732_v55, 1  ;;  %v772_v46 = vadd.f32 %v771_v40, %v732_v55  ;;  %v781_v58 = vmul.f32 %v732_v55, %v732_v55 }
 0x12b   : > { %v759_v61 = vsel %vm758_vm5, %v748_v43, %v749_v57  ;;  %773 = vst [vmem:[%s399_s15] sm:$0x1] %v772_v46  ;;  %v788_v62 = vadd.f32 %v787_v54, %v781_v58 }
 0x12c   : > { %v761_v45 = vsel %vm760_vm6, %v757_v60, %v759_v61 }
 0x12d   : > { %v763_v63 = vsel %vm762_vm7, %v755_v44, %v761_v45  ;;  %789 = vst [vmem:[%s404_s18] sm:$0x1] %v788_v62 }
 0x12e   : > { %765 = vst [vmem:[%s394_s21] sm:$0xff] %v763_v63 }
 0x12f PF: > { %s19_s29 = sadd.s32 1, %s1017_s29   ;;  %s1229_s27 = smov %s1013_s28 }
 0x130   : > { %p16_p5 = scmp.ge.s32.totalorder %s19_s29, 4   ;;  %s1230_s28 = smov %s1232_s30 }
 0x132   :  { %18 = sbr.rel (!%p16_p5) target bundleno = 2 (0x2), region = 101 }

// kernel: _attention_block_forward.5
= control target key start
LH: loop header
LB: loop body
LE: loop exit
PB: predicated region body
PF: predicated region fallthrough
CT: control target
= control target key end

     0   :  { %8 = vsyncpa [#allocation3], 0  ;;  %s631_s12 = smov 0   ;;  %s633_s13 = smov 0   ;;  %s791_s0 = inlined_call_operand.vmem [shape: f32[2,32,1024], index: 0, kind: input, shape index: {}]   ;;  %s792_s1 = inlined_call_operand.vmem [shape: f32[2,1,1024], index: 1, kind: input, shape index: {}]   ;;  %s793_s2 = inlined_call_operand.vmem [shape: f32[2], index: 2, kind: input, shape index: {}]   ;;  %s794_s3 = inlined_call_operand.vmem [shape: f32[2,32,1024], index: 3, kind: output, shape index: {}]  }
   0x1   :  { %s635_s14 = smov 0  }
   0x2 LB: > { %s510_s15 = sadd.s32 4294967295, %s608_s14   ;;  %s26_s16 = sadd.s32 1, %s604_s13  ;;  %s608_s14 = sphi %s635_s14, %s14_s14   ;;  %s604_s13 = sphi %s633_s13, %s796_s13   ;;  %s600_s12 = sphi %s631_s12, %s795_s12  }
   0x3   : > { %p28_p0 = scmp.ge.s32.totalorder %s26_s16, 2  ;;  %p512_p1 = scmp.ge.s32.totalorder %s608_s14, 1 }
   0x4   : > { %p136_p2 = scmp.lt.s32.totalorder %s608_s14, 3  ;;  %p536_p4 = scmp.eq.s32.totalorder %s510_s15, 0 }
   0x5   : > { %s798_s16 = smov (%p28_p0, %s26_s16), 0  ;;  %s148_s19 = sshll.u32 %s793_s2, 4  ;;  %s149_s19 = int_to_ptr.vmem [resolvable:$true] %s148_s19 }
   0x6   : > { %p137_p3 = pnand %p512_p1, %p136_p2  ;;  %s610_s20 = smov [#allocation2]  }
   0x8   : > { %p532_p5 = pneg %p137_p3  ;;  %186 = sbr.rel (%p137_p3) target bundleno = 91 (0x5b), region = 32 }
   0xa   : > { %p533_p6 = pnand %p536_p4, %p532_p5 }
   0xc   : > { %535 = dma.vmem_to_smem (!%p533_p6), %s149_s19, 16, %s610_s20, [#allocation3]  }
   0xd   : > { %595 = dma.done.wait (%p536_p4), [#allocation3], 16  }
   0xe   : > { %597 = vsyncadd (%p536_p4), [#allocation3], 4294967280 }
   0xf   : > { %193 = sfence }
  0x10   : > { %p229_p7 = scmp.lt.s32.totalorder %s600_s12, 1  ;;  %s257_s21 = sld [smem:[#allocation2]] }
  0x11   : > { %s522_s22 = sld [smem:[#allocation2 + $0x1]] }
  0x12   : > { %s800_s12 = smov (!%p229_p7, %s600_s12), 1 }
  0x13   : > { %s519_s23 = sshll.u32 %s800_s12, 3  ;;  %s526_s27 = sshll.u32 %s800_s12, 8 }
  0x14   : > { %s245_s26 = scalar_lea.vmem %s792_s1, %s519_s23  ;;  %s663_s30 = scalar_lea.vmem %s791_s0, %s526_s27 }
  0x15   : > { %v259_v0 = vld [vmem:[%s245_s26] sm:$0xff]  ;;  %v284_v19 = vld [vmem:[%s663_s30 + $0x8] sm:$0xff]  ;;  %v285_v20 = vld [vmem:[%s663_s30 + $0x10] sm:$0xff]  ;;  %s680_s6 = scalar_lea.vmem %s794_s3, %s526_s27 }
  0x16   : > { %v260_v1 = vstv %s257_s21  ;;  %v283_v18 = vld [vmem:[%s663_s30] sm:$0xff]  ;;  %v286_v24 = vld [vmem:[%s663_s30 + $0x18] sm:$0xff]  ;;  %v288_v32 = vld [vmem:[%s663_s30 + $0x28] sm:$0xff] }
  0x17   : > { %v261_v2 = vmul.f32 %v260_v1, %v259_v0  ;;  %v262_v3 = vstv %s522_s22  ;;  %v287_v26 = vld [vmem:[%s663_s30 + $0x20] sm:$0xff]  ;;  %v289_v35 = vld [vmem:[%s663_s30 + $0x30] sm:$0xff]  ;;  %v290_v38 = vld [vmem:[%s663_s30 + $0x38] sm:$0xff] }
  0x18   : > { %v291_v40 = vld [vmem:[%s663_s30 + $0x40] sm:$0xff]  ;;  %v292_v42 = vld [vmem:[%s663_s30 + $0x48] sm:$0xff]  ;;  %v293_v44 = vld [vmem:[%s663_s30 + $0x50] sm:$0xff] }
  0x19   : > { %v263_v4 = vadd.f32 %v262_v3, %v261_v2  ;;  %v294_v46 = vld [vmem:[%s663_s30 + $0x58] sm:$0xff]  ;;  %v295_v48 = vld [vmem:[%s663_s30 + $0x60] sm:$0xff]  ;;  %v296_v50 = vld [vmem:[%s663_s30 + $0x68] sm:$0xff] }
  0x1a   : > { %v297_v52 = vld [vmem:[%s663_s30 + $0x70] sm:$0xff]  ;;  %v298_v54 = vld [vmem:[%s663_s30 + $0x78] sm:$0xff]  ;;  %v299_v56 = vld [vmem:[%s663_s30 + $0x80] sm:$0xff] }
  0x1b   : > { %v523_v5 = vmul.f32 -1.442695, %v263_v4  ;;  %v300_v58 = vld [vmem:[%s663_s30 + $0x88] sm:$0xff]  ;;  %v301_v60 = vld [vmem:[%s663_s30 + $0x90] sm:$0xff]  ;;  %v302_v62 = vld [vmem:[%s663_s30 + $0x98] sm:$0xff] }
  0x1c   : > { %v303_v0 = vld [vmem:[%s663_s30 + $0xa0] sm:$0xff]  ;;  %v304_v2 = vld [vmem:[%s663_s30 + $0xa8] sm:$0xff]  ;;  %v305_v4 = vld [vmem:[%s663_s30 + $0xb0] sm:$0xff] }
  0x1d   : > { %563 = vpow2.f32 %v523_v5 }
  0x23   : > { %v564_v6 = vpop.eup %563 }
  0x24   : > { %v267_v7 = vadd.f32 1.0, %v564_v6  ;;  %v306_v6 = vld [vmem:[%s663_s30 + $0xb8] sm:$0xff] }
  0x26   : > { %565 = vrcp.f32 %v267_v7  ;;  %v279_v10 = vand.u32 2147483648, %v267_v7  ;;  %vm273_vm0 = vweird.f32 %v267_v7  ;;  %v277_v12 = vand.u32 2147483647, %v267_v7 }
  0x28   : > { %v280_v14 = vor.u32 1.1754944e-38, %v279_v10  ;;  %vm278_vm3 = vcmp.eq.f32.partialorder %v277_v12, 8.507059e+37  ;;  %v308_v10 = vld [vmem:[%s663_s30 + $0xc8] sm:$0xff]  ;;  %v309_v12 = vld [vmem:[%s663_s30 + $0xd0] sm:$0xff] }
  0x2c   : > { %v566_v8 = vpop.eup %565 }
  0x2d   : > { %v269_v9 = vmul.f32 %v566_v8, %v267_v7  ;;  %vm274_vm1 = vweird.f32 %v566_v8 }
  0x2e   : > { %vm275_vm2 = vmor %vm273_vm0, %vm274_vm1 }
  0x2f   : > { %v270_v11 = vsub.f32 1.0, %v269_v9 }
  0x31   : > { %v271_v13 = vmul.f32 %v566_v8, %v270_v11 }
  0x33   : > { %v272_v15 = vadd.f32 %v566_v8, %v271_v13 }
  0x35   : > { %v276_v16 = vsel %vm275_vm2, %v566_v8, %v272_v15  ;;  %v307_v8 = vld [vmem:[%s663_s30 + $0xc0] sm:$0xff] }
  0x36   : > { %v281_v17 = vsel %vm278_vm3, %v280_v14, %v276_v16  ;;  %v310_v14 = vld [vmem:[%s663_s30 + $0xd8] sm:$0xff]  ;;  %v311_v16 = vld [vmem:[%s663_s30 + $0xe0] sm:$0xff] }
  0x37   : > { %v668_v21 = vperm.slane %v281_v17, 0  ;;  %v670_v22 = vperm.slane %v281_v17, 1  ;;  %v672_v23 = vperm.slane %v281_v17, 2  ;;  %v675_v25 = vperm.slane %v281_v17, 3 }
  0x38   : > { %v683_v27 = vperm.slane %v281_v17, 4  ;;  %v685_v28 = vperm.slane %v281_v17, 5  ;;  %v691_v33 = vperm.slane %v281_v17, 6  ;;  %v695_v36 = vperm.slane %v281_v17, 7 }
  0x39   : > { %v332_v29 = vmul.f32 %v668_v21, %v283_v18  ;;  %v333_v30 = vmul.f32 %v670_v22, %v284_v19  ;;  %v334_v31 = vmul.f32 %v672_v23, %v285_v20  ;;  %v335_v34 = vmul.f32 %v675_v25, %v286_v24  ;;  %v312_v18 = vld [vmem:[%s663_s30 + $0xe8] sm:$0xff]  ;;  %v313_v20 = vld [vmem:[%s663_s30 + $0xf0] sm:$0xff]  ;;  %v314_v24 = vld [vmem:[%s663_s30 + $0xf8] sm:$0xff] }
  0x3a   : > { %v336_v37 = vmul.f32 %v683_v27, %v287_v26  ;;  %v337_v39 = vmul.f32 %v685_v28, %v288_v32  ;;  %v338_v41 = vmul.f32 %v691_v33, %v289_v35  ;;  %v339_v43 = vmul.f32 %v695_v36, %v290_v38 }
  0x3b   : > { %364 = vst [vmem:[%s680_s6] sm:$0xff] %v332_v29  ;;  %v340_v45 = vmul.f32 %v668_v21, %v291_v40  ;;  %v341_v47 = vmul.f32 %v670_v22, %v292_v42  ;;  %v342_v49 = vmul.f32 %v672_v23, %v293_v44  ;;  %v343_v51 = vmul.f32 %v675_v25, %v294_v46 }
  0x3c   : > { %365 = vst [vmem:[%s680_s6 + $0x8] sm:$0xff] %v333_v30  ;;  %v344_v53 = vmul.f32 %v683_v27, %v295_v48  ;;  %v345_v55 = vmul.f32 %v685_v28, %v296_v50  ;;  %v346_v57 = vmul.f32 %v691_v33, %v297_v52  ;;  %v347_v59 = vmul.f32 %v695_v36, %v298_v54 }
  0x3d   : > { %366 = vst [vmem:[%s680_s6 + $0x10] sm:$0xff] %v334_v31  ;;  %v348_v61 = vmul.f32 %v668_v21, %v299_v56  ;;  %v349_v63 = vmul.f32 %v670_v22, %v300_v58  ;;  %v350_v1 = vmul.f32 %v672_v23, %v301_v60  ;;  %v351_v3 = vmul.f32 %v675_v25, %v302_v62 }
  0x3e   : > { %367 = vst [vmem:[%s680_s6 + $0x18] sm:$0xff] %v335_v34  ;;  %v352_v5 = vmul.f32 %v683_v27, %v303_v0  ;;  %v353_v7 = vmul.f32 %v685_v28, %v304_v2  ;;  %v354_v9 = vmul.f32 %v691_v33, %v305_v4  ;;  %v355_v11 = vmul.f32 %v695_v36, %v306_v6 }
  0x3f   : > { %368 = vst [vmem:[%s680_s6 + $0x20] sm:$0xff] %v336_v37  ;;  %v356_v13 = vmul.f32 %v668_v21, %v307_v8  ;;  %v357_v15 = vmul.f32 %v670_v22, %v308_v10  ;;  %v358_v17 = vmul.f32 %v672_v23, %v309_v12  ;;  %v359_v19 = vmul.f32 %v675_v25, %v310_v14 }
  0x40   : > { %369 = vst [vmem:[%s680_s6 + $0x28] sm:$0xff] %v337_v39  ;;  %v360_v21 = vmul.f32 %v683_v27, %v311_v16  ;;  %v361_v22 = vmul.f32 %v685_v28, %v312_v18  ;;  %v362_v26 = vmul.f32 %v691_v33, %v313_v20  ;;  %v363_v23 = vmul.f32 %v695_v36, %v314_v24 }
  0x41   : > { %370 = vst [vmem:[%s680_s6 + $0x30] sm:$0xff] %v338_v41 }
  0x42   : > { %371 = vst [vmem:[%s680_s6 + $0x38] sm:$0xff] %v339_v43 }
  0x43   : > { %372 = vst [vmem:[%s680_s6 + $0x40] sm:$0xff] %v340_v45 }
  0x44   : > { %373 = vst [vmem:[%s680_s6 + $0x48] sm:$0xff] %v341_v47 }
  0x45   : > { %374 = vst [vmem:[%s680_s6 + $0x50] sm:$0xff] %v342_v49 }
  0x46   : > { %375 = vst [vmem:[%s680_s6 + $0x58] sm:$0xff] %v343_v51 }
  0x47   : > { %376 = vst [vmem:[%s680_s6 + $0x60] sm:$0xff] %v344_v53 }
  0x48   : > { %377 = vst [vmem:[%s680_s6 + $0x68] sm:$0xff] %v345_v55 }
  0x49   : > { %378 = vst [vmem:[%s680_s6 + $0x70] sm:$0xff] %v346_v57 }
  0x4a   : > { %379 = vst [vmem:[%s680_s6 + $0x78] sm:$0xff] %v347_v59 }
  0x4b   : > { %380 = vst [vmem:[%s680_s6 + $0x80] sm:$0xff] %v348_v61 }
  0x4c   : > { %381 = vst [vmem:[%s680_s6 + $0x88] sm:$0xff] %v349_v63 }
  0x4d   : > { %382 = vst [vmem:[%s680_s6 + $0x90] sm:$0xff] %v350_v1 }
  0x4e   : > { %383 = vst [vmem:[%s680_s6 + $0x98] sm:$0xff] %v351_v3 }
  0x4f   : > { %384 = vst [vmem:[%s680_s6 + $0xa0] sm:$0xff] %v352_v5 }
  0x50   : > { %385 = vst [vmem:[%s680_s6 + $0xa8] sm:$0xff] %v353_v7 }
  0x51   : > { %386 = vst [vmem:[%s680_s6 + $0xb0] sm:$0xff] %v354_v9 }
  0x52   : > { %387 = vst [vmem:[%s680_s6 + $0xb8] sm:$0xff] %v355_v11 }
  0x53   : > { %388 = vst [vmem:[%s680_s6 + $0xc0] sm:$0xff] %v356_v13 }
  0x54   : > { %389 = vst [vmem:[%s680_s6 + $0xc8] sm:$0xff] %v357_v15 }
  0x55   : > { %390 = vst [vmem:[%s680_s6 + $0xd0] sm:$0xff] %v358_v17 }
  0x56   : > { %391 = vst [vmem:[%s680_s6 + $0xd8] sm:$0xff] %v359_v19 }
  0x57   : > { %392 = vst [vmem:[%s680_s6 + $0xe0] sm:$0xff] %v360_v21 }
  0x58   : > { %393 = vst [vmem:[%s680_s6 + $0xe8] sm:$0xff] %v361_v22 }
  0x59   : > { %394 = vst [vmem:[%s680_s6 + $0xf0] sm:$0xff] %v362_v26 }
  0x5a   : > { %395 = vst [vmem:[%s680_s6 + $0xf8] sm:$0xff] %v363_v23 }
  0x5b PF: > { %s14_s14 = sadd.s32 1, %s608_s14   ;;  %s795_s12 = smov %s604_s13 }
  0x5c   : > { %p11_p8 = scmp.ge.s32.totalorder %s14_s14, 4   ;;  %s796_s13 = smov %s798_s16 }
  0x5e   :  { %13 = sbr.rel (!%p11_p8) target bundleno = 2 (0x2), region = 70 }
  0x63   :  { %426 = vsyncpa [#allocation3], 1 }
  0x64   :  { %428 = vsyncpa [#allocation3 + $0x1], 1 }

</bundles_post_ra>
